<compile_context>
chip_gen: v7x
topology: tpu7x:2x2x1
jax: 0.10.0
libtpu: 0.0.40
codegen_flags: <defaults>
</compile_context>

<pallas_src>
import functools

import numpy as np
import jax
import jax.numpy as jnp
from jax import lax
from jax.experimental import pallas as pl
from jax.experimental.pallas import tpu as pltpu

_LANE = 128
_VMEM = pl.BlockSpec(memory_space=pltpu.MemorySpace.VMEM)
_SMEM = pl.BlockSpec(memory_space=pltpu.MemorySpace.SMEM)
_HBM = pl.BlockSpec(memory_space=pl.ANY)


# ---------------------------------------------------------------------------
# Weight-slab packing (wrapper side, done once per parameter set)
# ---------------------------------------------------------------------------
def _tower_entries(in_X, hidden_t, hidden_X, num_layers, out_dim,
                   edge_dims=None):
    """Ordered (name, rows, cols) of every parameter packed into one slab."""
    ent = [("wt1", 1, hidden_t), ("bt1", 1, hidden_t),
           ("wt2", hidden_t, hidden_t), ("bt2", 1, hidden_t),
           ("wx1", in_X, hidden_X), ("bx1", 1, hidden_X),
           ("wx2", hidden_X, hidden_X), ("bx2", 1, hidden_X)]
    for l in range(num_layers):
        ent += [(f"wlx{l}", hidden_X, hidden_X),
                (f"wlt{l}", hidden_t, hidden_X),
                (f"bl{l}", 1, hidden_X),
                (f"gl{l}", 1, hidden_X),
                (f"betal{l}", 1, hidden_X)]
    hidden_cat = (num_layers + 1) * hidden_X + hidden_t
    for i in range(num_layers + 1):
        ent.append((f"wo1x{i}", hidden_X, hidden_cat))
    ent += [("wo1t", hidden_t, hidden_cat), ("bo1", 1, hidden_cat),
            ("wo2", hidden_cat, out_dim), ("bo2", 1, out_dim)]
    if edge_dims is not None:
        hidden_E, num_classes_E = edge_dims
        ent += [("we1", hidden_E, hidden_E), ("be1", 1, hidden_E),
                ("we2", hidden_E, num_classes_E), ("be2", 1, num_classes_E)]
    return ent


def _layout_of(entries):
    """name -> (row_offset, rows, cols); every entry 8-row (sublane) aligned."""
    layout, off = {}, 0
    for name, r, c in entries:
        layout[name] = (off, r, c)
        off += ((r + 7) // 8) * 8
    return layout, off


def _tower_values(p, num_layers, hidden_X, edge_params=None):
    v = {"wt1": p["t1"]["w"], "bt1": p["t1"]["b"],
         "wt2": p["t2"]["w"], "bt2": p["t2"]["b"],
         "wx1": p["x1"]["w"], "bx1": p["x1"]["b"],
         "wx2": p["x2"]["w"], "bx2": p["x2"]["b"]}
    for l, lp in enumerate(p["layers"]):
        v[f"wlx{l}"] = lp["w"][:hidden_X]      # split-K: node part
        v[f"wlt{l}"] = lp["w"][hidden_X:]      # split-K: time part
        v[f"bl{l}"] = lp["b"]
        v[f"gl{l}"] = lp["gamma"]
        v[f"betal{l}"] = lp["beta"]
    wo1 = p["o1"]["w"]
    for i in range(num_layers + 1):
        v[f"wo1x{i}"] = wo1[i * hidden_X:(i + 1) * hidden_X]
    v["wo1t"] = wo1[(num_layers + 1) * hidden_X:]
    v["bo1"] = p["o1"]["b"]
    v["wo2"] = p["o2"]["w"]
    v["bo2"] = p["o2"]["b"]
    if edge_params is not None:
        v["we1"] = edge_params["e1"]["w"]; v["be1"] = edge_params["e1"]["b"]
        v["we2"] = edge_params["e2"]["w"]; v["be2"] = edge_params["e2"]["b"]
    return v


def _pack_slab(values, entries, layout, total_rows):
    slab = np.zeros((total_rows, _LANE), np.float32)
    for name, r, c in entries:
        off = layout[name][0]
        slab[off:off + r, :c] = np.asarray(values[name],
                                           np.float32).reshape(r, c)
    return jnp.asarray(slab)


# ---------------------------------------------------------------------------
# In-kernel helpers
# ---------------------------------------------------------------------------
def _get(slab_ref, layout, name, full_lane=False):
    """Static slice of the packed weight slab (no separate DMA per operand)."""
    off, r, c = layout[name]
    if full_lane:
        return slab_ref[off:off + r, :]     # (r, 128), zero-padded columns
    return slab_ref[off:off + r, :c]


def _tower_math(t_scalar, x, get, num_layers, aggregate, lane_dense_out):
    """MLPTower / GNNTower forward entirely on VMEM-resident values."""
    dot = functools.partial(jnp.dot, preferred_element_type=jnp.float32)
    relu = lambda v: jnp.maximum(v, 0.0)

    # mlp_in_t: Linear(1, Ht) is scalar * row + bias (pure VPU).
    h_t = relu(t_scalar * get("wt1") + get("bt1"))          # (1, Ht)
    h_t = relu(dot(h_t, get("wt2")) + get("bt2"))           # (1, Ht)

    # mlp_in_X
    h = relu(dot(x, get("wx1")) + get("bx1"))               # (N, Hx)
    h = relu(dot(h, get("wx2")) + get("bx2"))               # (N, Hx)

    h_list = [h]
    for l in range(num_layers):
        h_aggr = aggregate(h, l)
        # split-K: [h_aggr | h_t] @ W == h_aggr @ W_x + (h_t @ W_t + b)
        t_row = dot(h_t, get(f"wlt{l}")) + get(f"bl{l}")    # (1, Hx)
        y = relu(dot(h_aggr, get(f"wlx{l}")) + t_row)       # (N, Hx)
        # LayerNorm (biased variance, eps=1e-5), f32 on the VPU.
        mean = jnp.mean(y, axis=-1, keepdims=True)
        var = jnp.mean(jnp.square(y - mean), axis=-1, keepdims=True)
        y = (y - mean) * lax.rsqrt(var + 1e-5)
        h = y * get(f"gl{l}") + get(f"betal{l}")
        h_list.append(h)                    # Dropout: eval-mode identity.

    # mlp_out first layer via split-K over the (virtual) concat.
    acc = dot(h_t, get("wo1t")) + get("bo1")                # (1, C)
    for i, hi in enumerate(h_list):
        acc = acc + dot(hi, get(f"wo1x{i}"))                # broadcasts (N, C)
    y = relu(acc)
    # Final projection; full_lane=True gives a lane-dense (rows, 128) result
    # (pad columns exactly zero) so the output store is an unmasked vst.
    return dot(y, get("wo2", lane_dense_out)) + get("bo2", lane_dense_out)


# ---------------------------------------------------------------------------
# The single fused kernel: pred_X tower + pred_E (GNN encoder + edge MLP)
# ---------------------------------------------------------------------------
def _fused_kernel(t_ref, nnz_ref, x1_ref, x2_ref, idx_ref, a_hbm_ref,
                  slab_x_ref, slab_e_ref, out_x_ref, out_e_ref,
                  a_vmem, dma_sem, *, layout_x, layout_e,
                  num_layers_x, num_layers_e, num_nodes, num_edges):
    use_A = nnz_ref[0] != 0

    # Kick off the only HBM transfer immediately; it overlaps with the whole
    # pred_X tower + pred_E input MLPs and is waited on just before the first
    # A @ h.  Skipped entirely for empty graphs (matches sparse A.nnz == 0).
    @pl.when(use_A)
    def _():
        pltpu.make_async_copy(a_hbm_ref, a_vmem, dma_sem).start()

    get_x = functools.partial(_get, slab_x_ref, layout_x)
    get_e = functools.partial(_get, slab_e_ref, layout_e)

    # ---- pred_X : MLPTower (no aggregation) ----
    out_x_ref[...] = _tower_math(t_ref[0], x1_ref[...], get_x, num_layers_x,
                                 aggregate=lambda h, l: h,
                                 lane_dense_out=True)

    # ---- pred_E : GNN encoder ----
    def aggregate(h, layer_idx):
        if layer_idx == 0:
            @pl.when(use_A)
            def _():
                pltpu.make_async_copy(a_hbm_ref, a_vmem, dma_sem).wait()
        # Value-returning cond keeps h in vregs (no scratch round trip) and
        # skips the MXU work on the empty-graph branch.
        return lax.cond(
            use_A,
            lambda: jnp.dot(a_vmem[...], h,
                            preferred_element_type=jnp.float32),
            lambda: h)

    h = _tower_math(t_ref[1], x2_ref[...], get_e, num_layers_e,
                    aggregate=aggregate, lane_dense_out=False)

    # Fused edge gather h[src]*h[dst]: ONE stacked (2E, N) one-hot selection
    # matmul (gather == matmul on TPU), then split and multiply.
    iota = lax.broadcasted_iota(jnp.int32, (2 * num_edges, num_nodes), 1)
    sel = (idx_ref[...] == iota).astype(jnp.float32)        # (2E, N)
    g = jnp.dot(sel, h, preferred_element_type=jnp.float32)  # (2E, hidden_E)
    he = g[:num_edges, :] * g[num_edges:, :]                 # (E, hidden_E)

    y = jnp.maximum(
        jnp.dot(he, get_e("we1"), preferred_element_type=jnp.float32)
        + get_e("be1"), 0.0)
    out_e_ref[...] = (jnp.dot(y, get_e("we2", True),
                              preferred_element_type=jnp.float32)
                      + get_e("be2", True))


# ---------------------------------------------------------------------------
# Cost estimate (advisory, from the actual per-matmul shapes)
# ---------------------------------------------------------------------------
def _fused_cost(n, e, in_X, Lx, Htx, Hxx, Le, Hte, Hxe, HE,
                num_classes_E, in_bytes, out_bytes):
    def tower(rows, Ht, Hx, L, out_dim, aggr_rows):
        hc = (L + 1) * Hx + Ht
        f = 2 * (Ht + Ht * Ht)                              # time MLP (1 row)
        f += 2 * rows * (in_X * Hx + Hx * Hx)               # mlp_in_X
        f += L * (2 * Ht * Hx + 2 * rows * Hx * Hx)         # per-layer update
        f += L * 2 * aggr_rows * aggr_rows * Hx             # A @ h (0 if MLP)
        f += 2 * Ht * hc + (L + 1) * 2 * rows * Hx * hc     # mlp_out layer 1
        f += 2 * rows * hc * out_dim                        # mlp_out layer 2
        return f
    flops = tower(n, Htx, Hxx, Lx, in_X, 0)
    flops += tower(n, Hte, Hxe, Le, HE, n)
    flops += 2 * (2 * e) * n * HE                           # one-hot gather
    flops += 2 * e * (HE * HE + HE * num_classes_E)         # edge MLP
    return pl.CostEstimate(flops=int(flops), transcendentals=0,
                           bytes_accessed=int(in_bytes + out_bytes))


# ---------------------------------------------------------------------------
# Wrapper: param packing + the single pallas_call forward
# ---------------------------------------------------------------------------
def make_forward(num_attrs_X, num_classes_X, num_classes_E,
                 mlp_X_config, gnn_E_config):
    in_X = num_attrs_X * num_classes_X
    Lx, Htx, Hxx = (mlp_X_config["num_mlp_layers"], mlp_X_config["hidden_t"],
                    mlp_X_config["hidden_X"])
    Le, Hte, Hxe, HE = (gnn_E_config["num_gnn_layers"],
                        gnn_E_config["hidden_t"], gnn_E_config["hidden_X"],
                        gnn_E_config["hidden_E"])

    ent_x = _tower_entries(in_X, Htx, Hxx, Lx, in_X)
    layout_x, rows_x = _layout_of(ent_x)
    ent_e = _tower_entries(in_X, Hte, Hxe, Le, HE,
                           edge_dims=(HE, num_classes_E))
    layout_e, rows_e = _layout_of(ent_e)

    def pack_params(params):
        """Pack the nested param tree into two lane-padded f32 VMEM slabs."""
        vx = _tower_values(params["pred_X"], Lx, Hxx)
        ve = _tower_values(params["pred_E"]["enc"], Le, Hxe,
                           edge_params=params["pred_E"])
        return (_pack_slab(vx, ent_x, layout_x, rows_x),
                _pack_slab(ve, ent_e, layout_e, rows_e))

    @jax.jit
    def forward(slab_X, slab_E, t_float_X, t_float_E, X_t_one_hot,
                X_one_hot_2d, A_t, A_nnz, batch_src, batch_dst):
        n = X_t_one_hot.shape[0]
        e = batch_src.shape[0]

        t_vals = jnp.concatenate(
            [t_float_X.reshape(-1), t_float_E.reshape(-1)]
        ).astype(jnp.float32)                                # (2,) SMEM
        nnz = A_nnz.astype(jnp.int32).reshape(1)             # (1,) SMEM
        idx = jnp.concatenate([batch_src, batch_dst]).astype(jnp.int32)
        idx = idx.reshape(2 * e, 1)                          # stacked src|dst

        slab_bytes = 4 * _LANE * (rows_x + rows_e)
        io_vmem = 4 * (2 * n * in_X + 2 * e + (n + e) * _LANE)
        vmem_need = 2 * (slab_bytes + io_vmem) + 4 * n * n
        vmem_limit = int(min(max(vmem_need + (4 << 20), 32 << 20), 64 << 20))

        cost = _fused_cost(
            n, e, in_X, Lx, Htx, Hxx, Le, Hte, Hxe, HE, num_classes_E,
            in_bytes=slab_bytes + 4 * (2 * n * in_X + 2 * e + n * n),
            out_bytes=4 * (n + e) * _LANE)

        out_x_pad, out_e_pad = pl.pallas_call(
            functools.partial(
                _fused_kernel, layout_x=layout_x, layout_e=layout_e,
                num_layers_x=Lx, num_layers_e=Le,
                num_nodes=n, num_edges=e),
            out_shape=(jax.ShapeDtypeStruct((n, _LANE), jnp.float32),
                       jax.ShapeDtypeStruct((e, _LANE), jnp.float32)),
            in_specs=[_SMEM, _SMEM, _VMEM, _VMEM, _VMEM, _HBM, _VMEM, _VMEM],
            out_specs=(_VMEM, _VMEM),
            scratch_shapes=[pltpu.VMEM((n, n), jnp.float32),  # A copy
                            pltpu.SemaphoreType.DMA],
            compiler_params=pltpu.CompilerParams(
                vmem_limit_bytes=vmem_limit),
            cost_estimate=cost,
        )(t_vals, nnz, X_t_one_hot, X_one_hot_2d, idx, A_t, slab_X, slab_E)

        logit_X = out_x_pad[:, :in_X].reshape(n, num_attrs_X, num_classes_X)
        logit_E = out_e_pad[:, :num_classes_E]
        return logit_X, logit_E

    return pack_params, forward


# ---------------------------------------------------------------------------
# Parameter init (deterministic, synthetic — not a checkpoint load)
# ---------------------------------------------------------------------------
def _keygen(key):
    while True:
        key, sub = jax.random.split(key)
        yield sub


def _init_linear(kg, fan_in, fan_out):
    w = jax.random.normal(next(kg), (fan_in, fan_out), jnp.float32)
    w = w / jnp.sqrt(jnp.float32(fan_in))
    b = 0.01 * jax.random.normal(next(kg), (fan_out,), jnp.float32)
    return {"w": w, "b": b}


def _init_tower(kg, in_X, hidden_t, hidden_X, num_layers, out_dim):
    hidden_cat = (num_layers + 1) * hidden_X + hidden_t
    p = {
        "t1": _init_linear(kg, 1, hidden_t),
        "t2": _init_linear(kg, hidden_t, hidden_t),
        "x1": _init_linear(kg, in_X, hidden_X),
        "x2": _init_linear(kg, hidden_X, hidden_X),
        "layers": [],
        "o1": _init_linear(kg, hidden_cat, hidden_cat),
        "o2": _init_linear(kg, hidden_cat, out_dim),
    }
    for _ in range(num_layers):
        lp = _init_linear(kg, hidden_X + hidden_t, hidden_X)
        lp["gamma"] = jnp.ones((hidden_X,), jnp.float32)
        lp["beta"] = jnp.zeros((hidden_X,), jnp.float32)
        p["layers"].append(lp)
    return p


def init_params(key, num_attrs_X, num_classes_E, num_classes_X,
                mlp_X_config, gnn_E_config):
    kg = _keygen(key)
    in_X = num_attrs_X * num_classes_X
    pred_X = _init_tower(kg, in_X,
                         mlp_X_config["hidden_t"], mlp_X_config["hidden_X"],
                         mlp_X_config["num_mlp_layers"], in_X)
    enc = _init_tower(kg, in_X,
                      gnn_E_config["hidden_t"], gnn_E_config["hidden_X"],
                      gnn_E_config["num_gnn_layers"], gnn_E_config["hidden_E"])
    pred_E = {
        "enc": enc,
        "e1": _init_linear(kg, gnn_E_config["hidden_E"],
                           gnn_E_config["hidden_E"]),
        "e2": _init_linear(kg, gnn_E_config["hidden_E"], num_classes_E),
    }
    return {"pred_X": pred_X, "pred_E": pred_E}


# ---------------------------------------------------------------------------
# Pure-JAX reference (mirrors the PyTorch module) for correctness checking
# ---------------------------------------------------------------------------
def _ref_tower(p, t, X, A=None):
    dot = functools.partial(jnp.dot, precision=lax.Precision.HIGHEST)
    relu = lambda v: jnp.maximum(v, 0.0)
    h_t = relu(dot(t, p["t1"]["w"]) + p["t1"]["b"])
    h_t = relu(dot(h_t, p["t2"]["w"]) + p["t2"]["b"])
    h = relu(dot(X, p["x1"]["w"]) + p["x1"]["b"])
    h = relu(dot(h, p["x2"]["w"]) + p["x2"]["b"])
    n = X.shape[0]
    h_t_e = jnp.broadcast_to(h_t, (n, h_t.shape[1]))
    hl = [h]
    for lp in p["layers"]:
        if A is None:
            h_aggr = h
        else:
            h_aggr = jnp.where(jnp.sum(A != 0) == 0, h, dot(A, h))
        hin = jnp.concatenate([h_aggr, h_t_e], axis=1)
        y = relu(dot(hin, lp["w"]) + lp["b"])
        mean = y.mean(-1, keepdims=True)
        var = jnp.square(y - mean).mean(-1, keepdims=True)
        y = (y - mean) / jnp.sqrt(var + 1e-5)
        h = y * lp["gamma"] + lp["beta"]
        hl.append(h)
    hc = jnp.concatenate(hl + [h_t_e], axis=1)
    y = relu(dot(hc, p["o1"]["w"]) + p["o1"]["b"])
    return dot(y, p["o2"]["w"]) + p["o2"]["b"]


def _ref_forward(params, num_attrs_X, t_x, t_e, X1, X2, A, src, dst):
    dot = functools.partial(jnp.dot, precision=lax.Precision.HIGHEST)
    n = X1.shape[0]
    lx = _ref_tower(params["pred_X"], t_x, X1).reshape(n, num_attrs_X, -1)
    h = _ref_tower(params["pred_E"]["enc"], t_e, X2, A)
    he = h[src] * h[dst]
    y = jnp.maximum(dot(he, params["pred_E"]["e1"]["w"])
                    + params["pred_E"]["e1"]["b"], 0.0)
    le = dot(y, params["pred_E"]["e2"]["w"]) + params["pred_E"]["e2"]["b"]
    return lx, le


# ---------------------------------------------------------------------------
if __name__ == "__main__":
    num_nodes = 8
    num_edges = 8
    num_attrs_X = 2
    num_classes_X = 3
    num_classes_E = 2
    in_X = num_attrs_X * num_classes_X

    mlp_X_config = dict(hidden_t=8, hidden_X=16, num_mlp_layers=2)
    gnn_E_config = dict(hidden_t=8, hidden_X=16, hidden_E=8, num_gnn_layers=2)

    key = jax.random.PRNGKey(0)
    k_par, k_x1, k_x2, k_t1, k_t2, k_a, k_s, k_d = jax.random.split(key, 8)

    params = init_params(k_par, num_attrs_X, num_classes_E, num_classes_X,
                         mlp_X_config, gnn_E_config)

    # Inputs
    t_float_X = jax.random.uniform(k_t1, (1, 1), jnp.float32)
    t_float_E = jax.random.uniform(k_t2, (1, 1), jnp.float32)

    idx1 = jax.random.randint(k_x1, (num_nodes, num_attrs_X), 0, num_classes_X)
    X_t_one_hot = jax.nn.one_hot(idx1, num_classes_X,
                                 dtype=jnp.float32).reshape(num_nodes, in_X)
    idx2 = jax.random.randint(k_x2, (num_nodes, num_attrs_X), 0, num_classes_X)
    X_one_hot_2d = jax.nn.one_hot(idx2, num_classes_X,
                                  dtype=jnp.float32).reshape(num_nodes, in_X)

    # Dense adjacency (symmetric, no diag).  nnz is produced alongside the
    # adjacency, NOT recomputed from a full HBM read of A inside the forward.
    A_dense = (jax.random.uniform(k_a, (num_nodes, num_nodes)) > 0.7)
    A_dense = jnp.triu(A_dense, 1)
    A_t = (A_dense + A_dense.T).astype(jnp.float32)
    A_nnz = jnp.sum(A_t != 0).astype(jnp.int32)

    batch_src = jax.random.randint(k_s, (num_edges,), 0, num_nodes, jnp.int32)
    batch_dst = jax.random.randint(k_d, (num_edges,), 0, num_nodes, jnp.int32)

    pack_params, forward = make_forward(num_attrs_X, num_classes_X,
                                        num_classes_E, mlp_X_config,
                                        gnn_E_config)
    slab_X, slab_E = pack_params(params)   # pack once, outside the hot path

    # --- non-empty graph ---
    logit_X, logit_E = forward(slab_X, slab_E, t_float_X, t_float_E,
                               X_t_one_hot, X_one_hot_2d, A_t, A_nnz,
                               batch_src, batch_dst)
    jax.block_until_ready((logit_X, logit_E))

    ref_X, ref_E = _ref_forward(params, num_attrs_X, t_float_X, t_float_E,
                                X_t_one_hot, X_one_hot_2d, A_t,
                                batch_src, batch_dst)

    assert logit_X.shape == (num_nodes, num_attrs_X, num_classes_X)
    assert logit_E.shape == (num_edges, num_classes_E)
    assert jnp.all(jnp.isfinite(logit_X)) and jnp.all(jnp.isfinite(logit_E))
    assert jnp.allclose(logit_X, ref_X, rtol=2e-2, atol=2e-2)
    assert jnp.allclose(logit_E, ref_E, rtol=2e-2, atol=2e-2)

    # --- empty graph: exercises nnz == 0 (A DMA and A@h skipped) ---
    A_zero = jnp.zeros_like(A_t)
    lX0, lE0 = forward(slab_X, slab_E, t_float_X, t_float_E, X_t_one_hot,
                       X_one_hot_2d, A_zero, jnp.int32(0),
                       batch_src, batch_dst)
    jax.block_until_ready((lX0, lE0))
    rX0, rE0 = _ref_forward(params, num_attrs_X, t_float_X, t_float_E,
                            X_t_one_hot, X_one_hot_2d, A_zero,
                            batch_src, batch_dst)
    assert jnp.all(jnp.isfinite(lX0)) and jnp.all(jnp.isfinite(lE0))
    assert jnp.allclose(lX0, rX0, rtol=2e-2, atol=2e-2)
    assert jnp.allclose(lE0, rE0, rtol=2e-2, atol=2e-2)

    print("KERNEL_OK")
</pallas_src>

<mosaic_0001>
module attributes {stable_mosaic.version = 11 : i64} {
  func.func @_fused_kernel(%arg0: memref<2xf32, #tpu.memory_space<smem>>, %arg1: memref<1xi32, #tpu.memory_space<smem>>, %arg2: memref<8x6xf32, #tpu.memory_space<vmem>>, %arg3: memref<8x6xf32, #tpu.memory_space<vmem>>, %arg4: memref<16x1xi32, #tpu.memory_space<vmem>>, %arg5: memref<8x8xf32, #tpu.memory_space<any>>, %arg6: memref<296x128xf32, #tpu.memory_space<vmem>>, %arg7: memref<328x128xf32, #tpu.memory_space<vmem>>, %arg8: memref<8x128xf32, #tpu.memory_space<vmem>>, %arg9: memref<8x128xf32, #tpu.memory_space<vmem>>, %arg10: memref<8x8xf32, #tpu.memory_space<vmem>>, %arg11: memref<!tpu.dma_semaphore, #tpu.memory_space<semaphore_mem>>) attributes {dimension_semantics = [], scalar_prefetch = 0 : i64, scratch_operands = 2 : i64, tpu.core_type = #tpu.core_type<tc>} {
    %c0 = arith.constant 0 : index
    %0 = memref.load %arg1[%c0] : memref<1xi32, #tpu.memory_space<smem>>
    %c0_i32 = arith.constant 0 : i32
    %1 = arith.cmpi ne, %0, %c0_i32 : i32
    %2 = arith.extui %1 : i1 to i32
    %c0_i32_0 = arith.constant 0 : i32
    %3 = arith.cmpi ne, %2, %c0_i32_0 : i32
    scf.if %3 {
      tpu.enqueue_dma source(%arg5 : memref<8x8xf32, #tpu.memory_space<any>>) target(%arg10 : memref<8x8xf32, #tpu.memory_space<vmem>>) target_semaphore(%arg11 : memref<!tpu.dma_semaphore, #tpu.memory_space<semaphore_mem>>)
    } else {
    }
    %c0_1 = arith.constant 0 : index
    %4 = memref.load %arg0[%c0_1] : memref<2xf32, #tpu.memory_space<smem>>
    %c0_2 = arith.constant 0 : index
    %c0_3 = arith.constant 0 : index
    %5 = vector.load %arg2[%c0_2, %c0_3] : memref<8x6xf32, #tpu.memory_space<vmem>>, vector<8x6xf32>
    %c0_4 = arith.constant 0 : index
    %c0_5 = arith.constant 0 : index
    %6 = vector.load %arg6[%c0_4, %c0_5] : memref<296x128xf32, #tpu.memory_space<vmem>>, vector<1x8xf32>
    %7 = vector.broadcast %4 : f32 to vector<1x8xf32>
    %8 = arith.mulf %7, %6 : vector<1x8xf32>
    %c8 = arith.constant 8 : index
    %c0_6 = arith.constant 0 : index
    %9 = vector.load %arg6[%c8, %c0_6] : memref<296x128xf32, #tpu.memory_space<vmem>>, vector<1x8xf32>
    %10 = arith.addf %8, %9 : vector<1x8xf32>
    %cst = arith.constant 0.000000e+00 : f32
    %11 = vector.broadcast %cst : f32 to vector<1x8xf32>
    %12 = arith.maximumf %10, %11 : vector<1x8xf32>
    %c16 = arith.constant 16 : index
    %c0_7 = arith.constant 0 : index
    %13 = vector.load %arg6[%c16, %c0_7] : memref<296x128xf32, #tpu.memory_space<vmem>>, vector<8x8xf32>
    %cst_8 = arith.constant dense<0.000000e+00> : vector<1x8xf32>
    %14 = tpu.matmul %12, %13, %cst_8 {dimension_numbers = #tpu.dot_dimension_numbers<[1], [0], [0], [1], [0, 0, 1, 1], [], []>} : vector<1x8xf32>, vector<8x8xf32>, vector<1x8xf32> -> vector<1x8xf32>
    %c24 = arith.constant 24 : index
    %c0_9 = arith.constant 0 : index
    %15 = vector.load %arg6[%c24, %c0_9] : memref<296x128xf32, #tpu.memory_space<vmem>>, vector<1x8xf32>
    %16 = arith.addf %14, %15 : vector<1x8xf32>
    %cst_10 = arith.constant 0.000000e+00 : f32
    %17 = vector.broadcast %cst_10 : f32 to vector<1x8xf32>
    %18 = arith.maximumf %16, %17 : vector<1x8xf32>
    %c32 = arith.constant 32 : index
    %c0_11 = arith.constant 0 : index
    %19 = vector.load %arg6[%c32, %c0_11] : memref<296x128xf32, #tpu.memory_space<vmem>>, vector<6x16xf32>
    %cst_12 = arith.constant dense<0.000000e+00> : vector<8x16xf32>
    %20 = tpu.matmul %5, %19, %cst_12 {dimension_numbers = #tpu.dot_dimension_numbers<[1], [0], [0], [1], [0, 0, 1, 1], [], []>} : vector<8x6xf32>, vector<6x16xf32>, vector<8x16xf32> -> vector<8x16xf32>
    %c40 = arith.constant 40 : index
    %c0_13 = arith.constant 0 : index
    %21 = vector.load %arg6[%c40, %c0_13] : memref<296x128xf32, #tpu.memory_space<vmem>>, vector<1x16xf32>
    %22 = vector.broadcast %21 : vector<1x16xf32> to vector<8x16xf32>
    %23 = arith.addf %20, %22 : vector<8x16xf32>
    %cst_14 = arith.constant 0.000000e+00 : f32
    %24 = vector.broadcast %cst_14 : f32 to vector<8x16xf32>
    %25 = arith.maximumf %23, %24 : vector<8x16xf32>
    %c48 = arith.constant 48 : index
    %c0_15 = arith.constant 0 : index
    %26 = vector.load %arg6[%c48, %c0_15] : memref<296x128xf32, #tpu.memory_space<vmem>>, vector<16x16xf32>
    %cst_16 = arith.constant dense<0.000000e+00> : vector<8x16xf32>
    %27 = tpu.matmul %25, %26, %cst_16 {dimension_numbers = #tpu.dot_dimension_numbers<[1], [0], [0], [1], [0, 0, 1, 1], [], []>} : vector<8x16xf32>, vector<16x16xf32>, vector<8x16xf32> -> vector<8x16xf32>
    %c64 = arith.constant 64 : index
    %c0_17 = arith.constant 0 : index
    %28 = vector.load %arg6[%c64, %c0_17] : memref<296x128xf32, #tpu.memory_space<vmem>>, vector<1x16xf32>
    %29 = vector.broadcast %28 : vector<1x16xf32> to vector<8x16xf32>
    %30 = arith.addf %27, %29 : vector<8x16xf32>
    %cst_18 = arith.constant 0.000000e+00 : f32
    %31 = vector.broadcast %cst_18 : f32 to vector<8x16xf32>
    %32 = arith.maximumf %30, %31 : vector<8x16xf32>
    %c88 = arith.constant 88 : index
    %c0_19 = arith.constant 0 : index
    %33 = vector.load %arg6[%c88, %c0_19] : memref<296x128xf32, #tpu.memory_space<vmem>>, vector<8x16xf32>
    %cst_20 = arith.constant dense<0.000000e+00> : vector<1x16xf32>
    %34 = tpu.matmul %18, %33, %cst_20 {dimension_numbers = #tpu.dot_dimension_numbers<[1], [0], [0], [1], [0, 0, 1, 1], [], []>} : vector<1x8xf32>, vector<8x16xf32>, vector<1x16xf32> -> vector<1x16xf32>
    %c96 = arith.constant 96 : index
    %c0_21 = arith.constant 0 : index
    %35 = vector.load %arg6[%c96, %c0_21] : memref<296x128xf32, #tpu.memory_space<vmem>>, vector<1x16xf32>
    %36 = arith.addf %34, %35 : vector<1x16xf32>
    %c72 = arith.constant 72 : index
    %c0_22 = arith.constant 0 : index
    %37 = vector.load %arg6[%c72, %c0_22] : memref<296x128xf32, #tpu.memory_space<vmem>>, vector<16x16xf32>
    %cst_23 = arith.constant dense<0.000000e+00> : vector<8x16xf32>
    %38 = tpu.matmul %32, %37, %cst_23 {dimension_numbers = #tpu.dot_dimension_numbers<[1], [0], [0], [1], [0, 0, 1, 1], [], []>} : vector<8x16xf32>, vector<16x16xf32>, vector<8x16xf32> -> vector<8x16xf32>
    %39 = vector.broadcast %36 : vector<1x16xf32> to vector<8x16xf32>
    %40 = arith.addf %38, %39 : vector<8x16xf32>
    %cst_24 = arith.constant 0.000000e+00 : f32
    %41 = vector.broadcast %cst_24 : f32 to vector<8x16xf32>
    %42 = arith.maximumf %40, %41 : vector<8x16xf32>
    %cst_25 = arith.constant dense<0.000000e+00> : vector<8xf32>
    %43 = vector.multi_reduction <add>, %42, %cst_25 [1] : vector<8x16xf32> to vector<8xf32>
    %44 = vector.shape_cast %43 : vector<8xf32> to vector<8x1xf32>
    %cst_26 = arith.constant 1.600000e+01 : f32
    %45 = vector.broadcast %cst_26 : f32 to vector<8x1xf32>
    %46 = arith.divf %44, %45 : vector<8x1xf32>
    %47 = vector.broadcast %46 : vector<8x1xf32> to vector<8x16xf32>
    %48 = arith.subf %42, %47 : vector<8x16xf32>
    %49 = arith.mulf %48, %48 : vector<8x16xf32>
    %cst_27 = arith.constant dense<0.000000e+00> : vector<8xf32>
    %50 = vector.multi_reduction <add>, %49, %cst_27 [1] : vector<8x16xf32> to vector<8xf32>
    %51 = vector.shape_cast %50 : vector<8xf32> to vector<8x1xf32>
    %cst_28 = arith.constant 1.600000e+01 : f32
    %52 = vector.broadcast %cst_28 : f32 to vector<8x1xf32>
    %53 = arith.divf %51, %52 : vector<8x1xf32>
    %54 = vector.broadcast %46 : vector<8x1xf32> to vector<8x16xf32>
    %55 = arith.subf %42, %54 : vector<8x16xf32>
    %cst_29 = arith.constant 9.99999974E-6 : f32
    %56 = vector.broadcast %cst_29 : f32 to vector<8x1xf32>
    %57 = arith.addf %53, %56 : vector<8x1xf32>
    %58 = math.rsqrt %57 : vector<8x1xf32>
    %59 = vector.broadcast %58 : vector<8x1xf32> to vector<8x16xf32>
    %60 = arith.mulf %55, %59 : vector<8x16xf32>
    %c104 = arith.constant 104 : index
    %c0_30 = arith.constant 0 : index
    %61 = vector.load %arg6[%c104, %c0_30] : memref<296x128xf32, #tpu.memory_space<vmem>>, vector<1x16xf32>
    %62 = vector.broadcast %61 : vector<1x16xf32> to vector<8x16xf32>
    %63 = arith.mulf %60, %62 : vector<8x16xf32>
    %c112 = arith.constant 112 : index
    %c0_31 = arith.constant 0 : index
    %64 = vector.load %arg6[%c112, %c0_31] : memref<296x128xf32, #tpu.memory_space<vmem>>, vector<1x16xf32>
    %65 = vector.broadcast %64 : vector<1x16xf32> to vector<8x16xf32>
    %66 = arith.addf %63, %65 : vector<8x16xf32>
    %c136 = arith.constant 136 : index
    %c0_32 = arith.constant 0 : index
    %67 = vector.load %arg6[%c136, %c0_32] : memref<296x128xf32, #tpu.memory_space<vmem>>, vector<8x16xf32>
    %cst_33 = arith.constant dense<0.000000e+00> : vector<1x16xf32>
    %68 = tpu.matmul %18, %67, %cst_33 {dimension_numbers = #tpu.dot_dimension_numbers<[1], [0], [0], [1], [0, 0, 1, 1], [], []>} : vector<1x8xf32>, vector<8x16xf32>, vector<1x16xf32> -> vector<1x16xf32>
    %c144 = arith.constant 144 : index
    %c0_34 = arith.constant 0 : index
    %69 = vector.load %arg6[%c144, %c0_34] : memref<296x128xf32, #tpu.memory_space<vmem>>, vector<1x16xf32>
    %70 = arith.addf %68, %69 : vector<1x16xf32>
    %c120 = arith.constant 120 : index
    %c0_35 = arith.constant 0 : index
    %71 = vector.load %arg6[%c120, %c0_35] : memref<296x128xf32, #tpu.memory_space<vmem>>, vector<16x16xf32>
    %cst_36 = arith.constant dense<0.000000e+00> : vector<8x16xf32>
    %72 = tpu.matmul %66, %71, %cst_36 {dimension_numbers = #tpu.dot_dimension_numbers<[1], [0], [0], [1], [0, 0, 1, 1], [], []>} : vector<8x16xf32>, vector<16x16xf32>, vector<8x16xf32> -> vector<8x16xf32>
    %73 = vector.broadcast %70 : vector<1x16xf32> to vector<8x16xf32>
    %74 = arith.addf %72, %73 : vector<8x16xf32>
    %cst_37 = arith.constant 0.000000e+00 : f32
    %75 = vector.broadcast %cst_37 : f32 to vector<8x16xf32>
    %76 = arith.maximumf %74, %75 : vector<8x16xf32>
    %cst_38 = arith.constant dense<0.000000e+00> : vector<8xf32>
    %77 = vector.multi_reduction <add>, %76, %cst_38 [1] : vector<8x16xf32> to vector<8xf32>
    %78 = vector.shape_cast %77 : vector<8xf32> to vector<8x1xf32>
    %cst_39 = arith.constant 1.600000e+01 : f32
    %79 = vector.broadcast %cst_39 : f32 to vector<8x1xf32>
    %80 = arith.divf %78, %79 : vector<8x1xf32>
    %81 = vector.broadcast %80 : vector<8x1xf32> to vector<8x16xf32>
    %82 = arith.subf %76, %81 : vector<8x16xf32>
    %83 = arith.mulf %82, %82 : vector<8x16xf32>
    %cst_40 = arith.constant dense<0.000000e+00> : vector<8xf32>
    %84 = vector.multi_reduction <add>, %83, %cst_40 [1] : vector<8x16xf32> to vector<8xf32>
    %85 = vector.shape_cast %84 : vector<8xf32> to vector<8x1xf32>
    %cst_41 = arith.constant 1.600000e+01 : f32
    %86 = vector.broadcast %cst_41 : f32 to vector<8x1xf32>
    %87 = arith.divf %85, %86 : vector<8x1xf32>
    %88 = vector.broadcast %80 : vector<8x1xf32> to vector<8x16xf32>
    %89 = arith.subf %76, %88 : vector<8x16xf32>
    %cst_42 = arith.constant 9.99999974E-6 : f32
    %90 = vector.broadcast %cst_42 : f32 to vector<8x1xf32>
    %91 = arith.addf %87, %90 : vector<8x1xf32>
    %92 = math.rsqrt %91 : vector<8x1xf32>
    %93 = vector.broadcast %92 : vector<8x1xf32> to vector<8x16xf32>
    %94 = arith.mulf %89, %93 : vector<8x16xf32>
    %c152 = arith.constant 152 : index
    %c0_43 = arith.constant 0 : index
    %95 = vector.load %arg6[%c152, %c0_43] : memref<296x128xf32, #tpu.memory_space<vmem>>, vector<1x16xf32>
    %96 = vector.broadcast %95 : vector<1x16xf32> to vector<8x16xf32>
    %97 = arith.mulf %94, %96 : vector<8x16xf32>
    %c160 = arith.constant 160 : index
    %c0_44 = arith.constant 0 : index
    %98 = vector.load %arg6[%c160, %c0_44] : memref<296x128xf32, #tpu.memory_space<vmem>>, vector<1x16xf32>
    %99 = vector.broadcast %98 : vector<1x16xf32> to vector<8x16xf32>
    %100 = arith.addf %97, %99 : vector<8x16xf32>
    %c216 = arith.constant 216 : index
    %c0_45 = arith.constant 0 : index
    %101 = vector.load %arg6[%c216, %c0_45] : memref<296x128xf32, #tpu.memory_space<vmem>>, vector<8x56xf32>
    %cst_46 = arith.constant dense<0.000000e+00> : vector<1x56xf32>
    %102 = tpu.matmul %18, %101, %cst_46 {dimension_numbers = #tpu.dot_dimension_numbers<[1], [0], [0], [1], [0, 0, 1, 1], [], []>} : vector<1x8xf32>, vector<8x56xf32>, vector<1x56xf32> -> vector<1x56xf32>
    %c224 = arith.constant 224 : index
    %c0_47 = arith.constant 0 : index
    %103 = vector.load %arg6[%c224, %c0_47] : memref<296x128xf32, #tpu.memory_space<vmem>>, vector<1x56xf32>
    %104 = arith.addf %102, %103 : vector<1x56xf32>
    %c168 = arith.constant 168 : index
    %c0_48 = arith.constant 0 : index
    %105 = vector.load %arg6[%c168, %c0_48] : memref<296x128xf32, #tpu.memory_space<vmem>>, vector<16x56xf32>
    %cst_49 = arith.constant dense<0.000000e+00> : vector<8x56xf32>
    %106 = tpu.matmul %32, %105, %cst_49 {dimension_numbers = #tpu.dot_dimension_numbers<[1], [0], [0], [1], [0, 0, 1, 1], [], []>} : vector<8x16xf32>, vector<16x56xf32>, vector<8x56xf32> -> vector<8x56xf32>
    %107 = vector.broadcast %104 : vector<1x56xf32> to vector<8x56xf32>
    %108 = arith.addf %107, %106 : vector<8x56xf32>
    %c184 = arith.constant 184 : index
    %c0_50 = arith.constant 0 : index
    %109 = vector.load %arg6[%c184, %c0_50] : memref<296x128xf32, #tpu.memory_space<vmem>>, vector<16x56xf32>
    %cst_51 = arith.constant dense<0.000000e+00> : vector<8x56xf32>
    %110 = tpu.matmul %66, %109, %cst_51 {dimension_numbers = #tpu.dot_dimension_numbers<[1], [0], [0], [1], [0, 0, 1, 1], [], []>} : vector<8x16xf32>, vector<16x56xf32>, vector<8x56xf32> -> vector<8x56xf32>
    %111 = arith.addf %108, %110 : vector<8x56xf32>
    %c200 = arith.constant 200 : index
    %c0_52 = arith.constant 0 : index
    %112 = vector.load %arg6[%c200, %c0_52] : memref<296x128xf32, #tpu.memory_space<vmem>>, vector<16x56xf32>
    %cst_53 = arith.constant dense<0.000000e+00> : vector<8x56xf32>
    %113 = tpu.matmul %100, %112, %cst_53 {dimension_numbers = #tpu.dot_dimension_numbers<[1], [0], [0], [1], [0, 0, 1, 1], [], []>} : vector<8x16xf32>, vector<16x56xf32>, vector<8x56xf32> -> vector<8x56xf32>
    %114 = arith.addf %111, %113 : vector<8x56xf32>
    %cst_54 = arith.constant 0.000000e+00 : f32
    %115 = vector.broadcast %cst_54 : f32 to vector<8x56xf32>
    %116 = arith.maximumf %114, %115 : vector<8x56xf32>
    %c232 = arith.constant 232 : index
    %c0_55 = arith.constant 0 : index
    %117 = vector.load %arg6[%c232, %c0_55] : memref<296x128xf32, #tpu.memory_space<vmem>>, vector<56x128xf32>
    %cst_56 = arith.constant dense<0.000000e+00> : vector<8x128xf32>
    %118 = tpu.matmul %116, %117, %cst_56 {dimension_numbers = #tpu.dot_dimension_numbers<[1], [0], [0], [1], [0, 0, 1, 1], [], []>} : vector<8x56xf32>, vector<56x128xf32>, vector<8x128xf32> -> vector<8x128xf32>
    %c288 = arith.constant 288 : index
    %c0_57 = arith.constant 0 : index
    %119 = vector.load %arg6[%c288, %c0_57] : memref<296x128xf32, #tpu.memory_space<vmem>>, vector<1x128xf32>
    %120 = vector.broadcast %119 : vector<1x128xf32> to vector<8x128xf32>
    %121 = arith.addf %118, %120 : vector<8x128xf32>
    %c0_58 = arith.constant 0 : index
    %c0_59 = arith.constant 0 : index
    %122 = vector.load %arg8[%c0_58, %c0_59] : memref<8x128xf32, #tpu.memory_space<vmem>>, vector<8x128xf32>
    tpu.vector_store %arg8[%c0_58, %c0_59], %121 {strides = array<i32>} : memref<8x128xf32, #tpu.memory_space<vmem>>, vector<8x128xf32>,
    %c1 = arith.constant 1 : index
    %123 = memref.load %arg0[%c1] : memref<2xf32, #tpu.memory_space<smem>>
    %c0_60 = arith.constant 0 : index
    %c0_61 = arith.constant 0 : index
    %124 = vector.load %arg3[%c0_60, %c0_61] : memref<8x6xf32, #tpu.memory_space<vmem>>, vector<8x6xf32>
    %c0_62 = arith.constant 0 : index
    %c0_63 = arith.constant 0 : index
    %125 = vector.load %arg7[%c0_62, %c0_63] : memref<328x128xf32, #tpu.memory_space<vmem>>, vector<1x8xf32>
    %126 = vector.broadcast %123 : f32 to vector<1x8xf32>
    %127 = arith.mulf %126, %125 : vector<1x8xf32>
    %c8_64 = arith.constant 8 : index
    %c0_65 = arith.constant 0 : index
    %128 = vector.load %arg7[%c8_64, %c0_65] : memref<328x128xf32, #tpu.memory_space<vmem>>, vector<1x8xf32>
    %129 = arith.addf %127, %128 : vector<1x8xf32>
    %cst_66 = arith.constant 0.000000e+00 : f32
    %130 = vector.broadcast %cst_66 : f32 to vector<1x8xf32>
    %131 = arith.maximumf %129, %130 : vector<1x8xf32>
    %c16_67 = arith.constant 16 : index
    %c0_68 = arith.constant 0 : index
    %132 = vector.load %arg7[%c16_67, %c0_68] : memref<328x128xf32, #tpu.memory_space<vmem>>, vector<8x8xf32>
    %cst_69 = arith.constant dense<0.000000e+00> : vector<1x8xf32>
    %133 = tpu.matmul %131, %132, %cst_69 {dimension_numbers = #tpu.dot_dimension_numbers<[1], [0], [0], [1], [0, 0, 1, 1], [], []>} : vector<1x8xf32>, vector<8x8xf32>, vector<1x8xf32> -> vector<1x8xf32>
    %c24_70 = arith.constant 24 : index
    %c0_71 = arith.constant 0 : index
    %134 = vector.load %arg7[%c24_70, %c0_71] : memref<328x128xf32, #tpu.memory_space<vmem>>, vector<1x8xf32>
    %135 = arith.addf %133, %134 : vector<1x8xf32>
    %cst_72 = arith.constant 0.000000e+00 : f32
    %136 = vector.broadcast %cst_72 : f32 to vector<1x8xf32>
    %137 = arith.maximumf %135, %136 : vector<1x8xf32>
    %c32_73 = arith.constant 32 : index
    %c0_74 = arith.constant 0 : index
    %138 = vector.load %arg7[%c32_73, %c0_74] : memref<328x128xf32, #tpu.memory_space<vmem>>, vector<6x16xf32>
    %cst_75 = arith.constant dense<0.000000e+00> : vector<8x16xf32>
    %139 = tpu.matmul %124, %138, %cst_75 {dimension_numbers = #tpu.dot_dimension_numbers<[1], [0], [0], [1], [0, 0, 1, 1], [], []>} : vector<8x6xf32>, vector<6x16xf32>, vector<8x16xf32> -> vector<8x16xf32>
    %c40_76 = arith.constant 40 : index
    %c0_77 = arith.constant 0 : index
    %140 = vector.load %arg7[%c40_76, %c0_77] : memref<328x128xf32, #tpu.memory_space<vmem>>, vector<1x16xf32>
    %141 = vector.broadcast %140 : vector<1x16xf32> to vector<8x16xf32>
    %142 = arith.addf %139, %141 : vector<8x16xf32>
    %cst_78 = arith.constant 0.000000e+00 : f32
    %143 = vector.broadcast %cst_78 : f32 to vector<8x16xf32>
    %144 = arith.maximumf %142, %143 : vector<8x16xf32>
    %c48_79 = arith.constant 48 : index
    %c0_80 = arith.constant 0 : index
    %145 = vector.load %arg7[%c48_79, %c0_80] : memref<328x128xf32, #tpu.memory_space<vmem>>, vector<16x16xf32>
    %cst_81 = arith.constant dense<0.000000e+00> : vector<8x16xf32>
    %146 = tpu.matmul %144, %145, %cst_81 {dimension_numbers = #tpu.dot_dimension_numbers<[1], [0], [0], [1], [0, 0, 1, 1], [], []>} : vector<8x16xf32>, vector<16x16xf32>, vector<8x16xf32> -> vector<8x16xf32>
    %c64_82 = arith.constant 64 : index
    %c0_83 = arith.constant 0 : index
    %147 = vector.load %arg7[%c64_82, %c0_83] : memref<328x128xf32, #tpu.memory_space<vmem>>, vector<1x16xf32>
    %148 = vector.broadcast %147 : vector<1x16xf32> to vector<8x16xf32>
    %149 = arith.addf %146, %148 : vector<8x16xf32>
    %cst_84 = arith.constant 0.000000e+00 : f32
    %150 = vector.broadcast %cst_84 : f32 to vector<8x16xf32>
    %151 = arith.maximumf %149, %150 : vector<8x16xf32>
    %152 = arith.extui %1 : i1 to i32
    %c0_i32_85 = arith.constant 0 : i32
    %153 = arith.cmpi ne, %152, %c0_i32_85 : i32
    scf.if %153 {
      tpu.wait_dma2 semaphore(%arg11 : memref<!tpu.dma_semaphore, #tpu.memory_space<semaphore_mem>>) src(%arg5 : memref<8x8xf32, #tpu.memory_space<any>>) dst(%arg10 : memref<8x8xf32, #tpu.memory_space<vmem>>)
    } else {
    }
    %154 = arith.extui %1 : i1 to i32
    %c0_i32_86 = arith.constant 0 : i32
    %155 = arith.cmpi ne, %154, %c0_i32_86 : i32
    %156 = scf.if %155 -> (vector<8x16xf32>) {
      %c0_156 = arith.constant 0 : index
      %c0_157 = arith.constant 0 : index
      %272 = vector.load %arg10[%c0_156, %c0_157] : memref<8x8xf32, #tpu.memory_space<vmem>>, vector<8x8xf32>
      %cst_158 = arith.constant dense<0.000000e+00> : vector<8x16xf32>
      %273 = tpu.matmul %272, %151, %cst_158 {dimension_numbers = #tpu.dot_dimension_numbers<[1], [0], [0], [1], [0, 0, 1, 1], [], []>} : vector<8x8xf32>, vector<8x16xf32>, vector<8x16xf32> -> vector<8x16xf32>
      scf.yield %273 : vector<8x16xf32>
    } else {
      scf.yield %151 : vector<8x16xf32>
    }
    %c88_87 = arith.constant 88 : index
    %c0_88 = arith.constant 0 : index
    %157 = vector.load %arg7[%c88_87, %c0_88] : memref<328x128xf32, #tpu.memory_space<vmem>>, vector<8x16xf32>
    %cst_89 = arith.constant dense<0.000000e+00> : vector<1x16xf32>
    %158 = tpu.matmul %137, %157, %cst_89 {dimension_numbers = #tpu.dot_dimension_numbers<[1], [0], [0], [1], [0, 0, 1, 1], [], []>} : vector<1x8xf32>, vector<8x16xf32>, vector<1x16xf32> -> vector<1x16xf32>
    %c96_90 = arith.constant 96 : index
    %c0_91 = arith.constant 0 : index
    %159 = vector.load %arg7[%c96_90, %c0_91] : memref<328x128xf32, #tpu.memory_space<vmem>>, vector<1x16xf32>
    %160 = arith.addf %158, %159 : vector<1x16xf32>
    %c72_92 = arith.constant 72 : index
    %c0_93 = arith.constant 0 : index
    %161 = vector.load %arg7[%c72_92, %c0_93] : memref<328x128xf32, #tpu.memory_space<vmem>>, vector<16x16xf32>
    %cst_94 = arith.constant dense<0.000000e+00> : vector<8x16xf32>
    %162 = tpu.matmul %156, %161, %cst_94 {dimension_numbers = #tpu.dot_dimension_numbers<[1], [0], [0], [1], [0, 0, 1, 1], [], []>} : vector<8x16xf32>, vector<16x16xf32>, vector<8x16xf32> -> vector<8x16xf32>
    %163 = vector.broadcast %160 : vector<1x16xf32> to vector<8x16xf32>
    %164 = arith.addf %162, %163 : vector<8x16xf32>
    %cst_95 = arith.constant 0.000000e+00 : f32
    %165 = vector.broadcast %cst_95 : f32 to vector<8x16xf32>
    %166 = arith.maximumf %164, %165 : vector<8x16xf32>
    %cst_96 = arith.constant dense<0.000000e+00> : vector<8xf32>
    %167 = vector.multi_reduction <add>, %166, %cst_96 [1] : vector<8x16xf32> to vector<8xf32>
    %168 = vector.shape_cast %167 : vector<8xf32> to vector<8x1xf32>
    %cst_97 = arith.constant 1.600000e+01 : f32
    %169 = vector.broadcast %cst_97 : f32 to vector<8x1xf32>
    %170 = arith.divf %168, %169 : vector<8x1xf32>
    %171 = vector.broadcast %170 : vector<8x1xf32> to vector<8x16xf32>
    %172 = arith.subf %166, %171 : vector<8x16xf32>
    %173 = arith.mulf %172, %172 : vector<8x16xf32>
    %cst_98 = arith.constant dense<0.000000e+00> : vector<8xf32>
    %174 = vector.multi_reduction <add>, %173, %cst_98 [1] : vector<8x16xf32> to vector<8xf32>
    %175 = vector.shape_cast %174 : vector<8xf32> to vector<8x1xf32>
    %cst_99 = arith.constant 1.600000e+01 : f32
    %176 = vector.broadcast %cst_99 : f32 to vector<8x1xf32>
    %177 = arith.divf %175, %176 : vector<8x1xf32>
    %178 = vector.broadcast %170 : vector<8x1xf32> to vector<8x16xf32>
    %179 = arith.subf %166, %178 : vector<8x16xf32>
    %cst_100 = arith.constant 9.99999974E-6 : f32
    %180 = vector.broadcast %cst_100 : f32 to vector<8x1xf32>
    %181 = arith.addf %177, %180 : vector<8x1xf32>
    %182 = math.rsqrt %181 : vector<8x1xf32>
    %183 = vector.broadcast %182 : vector<8x1xf32> to vector<8x16xf32>
    %184 = arith.mulf %179, %183 : vector<8x16xf32>
    %c104_101 = arith.constant 104 : index
    %c0_102 = arith.constant 0 : index
    %185 = vector.load %arg7[%c104_101, %c0_102] : memref<328x128xf32, #tpu.memory_space<vmem>>, vector<1x16xf32>
    %186 = vector.broadcast %185 : vector<1x16xf32> to vector<8x16xf32>
    %187 = arith.mulf %184, %186 : vector<8x16xf32>
    %c112_103 = arith.constant 112 : index
    %c0_104 = arith.constant 0 : index
    %188 = vector.load %arg7[%c112_103, %c0_104] : memref<328x128xf32, #tpu.memory_space<vmem>>, vector<1x16xf32>
    %189 = vector.broadcast %188 : vector<1x16xf32> to vector<8x16xf32>
    %190 = arith.addf %187, %189 : vector<8x16xf32>
    %191 = arith.extui %1 : i1 to i32
    %c0_i32_105 = arith.constant 0 : i32
    %192 = arith.cmpi ne, %191, %c0_i32_105 : i32
    %193 = scf.if %192 -> (vector<8x16xf32>) {
      %c0_156 = arith.constant 0 : index
      %c0_157 = arith.constant 0 : index
      %272 = vector.load %arg10[%c0_156, %c0_157] : memref<8x8xf32, #tpu.memory_space<vmem>>, vector<8x8xf32>
      %cst_158 = arith.constant dense<0.000000e+00> : vector<8x16xf32>
      %273 = tpu.matmul %272, %190, %cst_158 {dimension_numbers = #tpu.dot_dimension_numbers<[1], [0], [0], [1], [0, 0, 1, 1], [], []>} : vector<8x8xf32>, vector<8x16xf32>, vector<8x16xf32> -> vector<8x16xf32>
      scf.yield %273 : vector<8x16xf32>
    } else {
      scf.yield %190 : vector<8x16xf32>
    }
    %c136_106 = arith.constant 136 : index
    %c0_107 = arith.constant 0 : index
    %194 = vector.load %arg7[%c136_106, %c0_107] : memref<328x128xf32, #tpu.memory_space<vmem>>, vector<8x16xf32>
    %cst_108 = arith.constant dense<0.000000e+00> : vector<1x16xf32>
    %195 = tpu.matmul %137, %194, %cst_108 {dimension_numbers = #tpu.dot_dimension_numbers<[1], [0], [0], [1], [0, 0, 1, 1], [], []>} : vector<1x8xf32>, vector<8x16xf32>, vector<1x16xf32> -> vector<1x16xf32>
    %c144_109 = arith.constant 144 : index
    %c0_110 = arith.constant 0 : index
    %196 = vector.load %arg7[%c144_109, %c0_110] : memref<328x128xf32, #tpu.memory_space<vmem>>, vector<1x16xf32>
    %197 = arith.addf %195, %196 : vector<1x16xf32>
    %c120_111 = arith.constant 120 : index
    %c0_112 = arith.constant 0 : index
    %198 = vector.load %arg7[%c120_111, %c0_112] : memref<328x128xf32, #tpu.memory_space<vmem>>, vector<16x16xf32>
    %cst_113 = arith.constant dense<0.000000e+00> : vector<8x16xf32>
    %199 = tpu.matmul %193, %198, %cst_113 {dimension_numbers = #tpu.dot_dimension_numbers<[1], [0], [0], [1], [0, 0, 1, 1], [], []>} : vector<8x16xf32>, vector<16x16xf32>, vector<8x16xf32> -> vector<8x16xf32>
    %200 = vector.broadcast %197 : vector<1x16xf32> to vector<8x16xf32>
    %201 = arith.addf %199, %200 : vector<8x16xf32>
    %cst_114 = arith.constant 0.000000e+00 : f32
    %202 = vector.broadcast %cst_114 : f32 to vector<8x16xf32>
    %203 = arith.maximumf %201, %202 : vector<8x16xf32>
    %cst_115 = arith.constant dense<0.000000e+00> : vector<8xf32>
    %204 = vector.multi_reduction <add>, %203, %cst_115 [1] : vector<8x16xf32> to vector<8xf32>
    %205 = vector.shape_cast %204 : vector<8xf32> to vector<8x1xf32>
    %cst_116 = arith.constant 1.600000e+01 : f32
    %206 = vector.broadcast %cst_116 : f32 to vector<8x1xf32>
    %207 = arith.divf %205, %206 : vector<8x1xf32>
    %208 = vector.broadcast %207 : vector<8x1xf32> to vector<8x16xf32>
    %209 = arith.subf %203, %208 : vector<8x16xf32>
    %210 = arith.mulf %209, %209 : vector<8x16xf32>
    %cst_117 = arith.constant dense<0.000000e+00> : vector<8xf32>
    %211 = vector.multi_reduction <add>, %210, %cst_117 [1] : vector<8x16xf32> to vector<8xf32>
    %212 = vector.shape_cast %211 : vector<8xf32> to vector<8x1xf32>
    %cst_118 = arith.constant 1.600000e+01 : f32
    %213 = vector.broadcast %cst_118 : f32 to vector<8x1xf32>
    %214 = arith.divf %212, %213 : vector<8x1xf32>
    %215 = vector.broadcast %207 : vector<8x1xf32> to vector<8x16xf32>
    %216 = arith.subf %203, %215 : vector<8x16xf32>
    %cst_119 = arith.constant 9.99999974E-6 : f32
    %217 = vector.broadcast %cst_119 : f32 to vector<8x1xf32>
    %218 = arith.addf %214, %217 : vector<8x1xf32>
    %219 = math.rsqrt %218 : vector<8x1xf32>
    %220 = vector.broadcast %219 : vector<8x1xf32> to vector<8x16xf32>
    %221 = arith.mulf %216, %220 : vector<8x16xf32>
    %c152_120 = arith.constant 152 : index
    %c0_121 = arith.constant 0 : index
    %222 = vector.load %arg7[%c152_120, %c0_121] : memref<328x128xf32, #tpu.memory_space<vmem>>, vector<1x16xf32>
    %223 = vector.broadcast %222 : vector<1x16xf32> to vector<8x16xf32>
    %224 = arith.mulf %221, %223 : vector<8x16xf32>
    %c160_122 = arith.constant 160 : index
    %c0_123 = arith.constant 0 : index
    %225 = vector.load %arg7[%c160_122, %c0_123] : memref<328x128xf32, #tpu.memory_space<vmem>>, vector<1x16xf32>
    %226 = vector.broadcast %225 : vector<1x16xf32> to vector<8x16xf32>
    %227 = arith.addf %224, %226 : vector<8x16xf32>
    %c216_124 = arith.constant 216 : index
    %c0_125 = arith.constant 0 : index
    %228 = vector.load %arg7[%c216_124, %c0_125] : memref<328x128xf32, #tpu.memory_space<vmem>>, vector<8x56xf32>
    %cst_126 = arith.constant dense<0.000000e+00> : vector<1x56xf32>
    %229 = tpu.matmul %137, %228, %cst_126 {dimension_numbers = #tpu.dot_dimension_numbers<[1], [0], [0], [1], [0, 0, 1, 1], [], []>} : vector<1x8xf32>, vector<8x56xf32>, vector<1x56xf32> -> vector<1x56xf32>
    %c224_127 = arith.constant 224 : index
    %c0_128 = arith.constant 0 : index
    %230 = vector.load %arg7[%c224_127, %c0_128] : memref<328x128xf32, #tpu.memory_space<vmem>>, vector<1x56xf32>
    %231 = arith.addf %229, %230 : vector<1x56xf32>
    %c168_129 = arith.constant 168 : index
    %c0_130 = arith.constant 0 : index
    %232 = vector.load %arg7[%c168_129, %c0_130] : memref<328x128xf32, #tpu.memory_space<vmem>>, vector<16x56xf32>
    %cst_131 = arith.constant dense<0.000000e+00> : vector<8x56xf32>
    %233 = tpu.matmul %151, %232, %cst_131 {dimension_numbers = #tpu.dot_dimension_numbers<[1], [0], [0], [1], [0, 0, 1, 1], [], []>} : vector<8x16xf32>, vector<16x56xf32>, vector<8x56xf32> -> vector<8x56xf32>
    %234 = vector.broadcast %231 : vector<1x56xf32> to vector<8x56xf32>
    %235 = arith.addf %234, %233 : vector<8x56xf32>
    %c184_132 = arith.constant 184 : index
    %c0_133 = arith.constant 0 : index
    %236 = vector.load %arg7[%c184_132, %c0_133] : memref<328x128xf32, #tpu.memory_space<vmem>>, vector<16x56xf32>
    %cst_134 = arith.constant dense<0.000000e+00> : vector<8x56xf32>
    %237 = tpu.matmul %190, %236, %cst_134 {dimension_numbers = #tpu.dot_dimension_numbers<[1], [0], [0], [1], [0, 0, 1, 1], [], []>} : vector<8x16xf32>, vector<16x56xf32>, vector<8x56xf32> -> vector<8x56xf32>
    %238 = arith.addf %235, %237 : vector<8x56xf32>
    %c200_135 = arith.constant 200 : index
    %c0_136 = arith.constant 0 : index
    %239 = vector.load %arg7[%c200_135, %c0_136] : memref<328x128xf32, #tpu.memory_space<vmem>>, vector<16x56xf32>
    %cst_137 = arith.constant dense<0.000000e+00> : vector<8x56xf32>
    %240 = tpu.matmul %227, %239, %cst_137 {dimension_numbers = #tpu.dot_dimension_numbers<[1], [0], [0], [1], [0, 0, 1, 1], [], []>} : vector<8x16xf32>, vector<16x56xf32>, vector<8x56xf32> -> vector<8x56xf32>
    %241 = arith.addf %238, %240 : vector<8x56xf32>
    %cst_138 = arith.constant 0.000000e+00 : f32
    %242 = vector.broadcast %cst_138 : f32 to vector<8x56xf32>
    %243 = arith.maximumf %241, %242 : vector<8x56xf32>
    %c232_139 = arith.constant 232 : index
    %c0_140 = arith.constant 0 : index
    %244 = vector.load %arg7[%c232_139, %c0_140] : memref<328x128xf32, #tpu.memory_space<vmem>>, vector<56x8xf32>
    %cst_141 = arith.constant dense<0.000000e+00> : vector<8x8xf32>
    %245 = tpu.matmul %243, %244, %cst_141 {dimension_numbers = #tpu.dot_dimension_numbers<[1], [0], [0], [1], [0, 0, 1, 1], [], []>} : vector<8x56xf32>, vector<56x8xf32>, vector<8x8xf32> -> vector<8x8xf32>
    %c288_142 = arith.constant 288 : index
    %c0_143 = arith.constant 0 : index
    %246 = vector.load %arg7[%c288_142, %c0_143] : memref<328x128xf32, #tpu.memory_space<vmem>>, vector<1x8xf32>
    %247 = vector.broadcast %246 : vector<1x8xf32> to vector<8x8xf32>
    %248 = arith.addf %245, %247 : vector<8x8xf32>
    %249 = tpu.iota {dimensions = array<i32: 1>} : vector<16x8xi32>
    %c0_144 = arith.constant 0 : index
    %c0_145 = arith.constant 0 : index
    %250 = vector.load %arg4[%c0_144, %c0_145] : memref<16x1xi32, #tpu.memory_space<vmem>>, vector<16x1xi32>
    %251 = vector.broadcast %250 : vector<16x1xi32> to vector<16x8xi32>
    %252 = arith.cmpi eq, %251, %249 : vector<16x8xi32>
    %253 = arith.extui %252 : vector<16x8xi1> to vector<16x8xi32>
    %254 = arith.sitofp %253 : vector<16x8xi32> to vector<16x8xf32>
    %cst_146 = arith.constant dense<0.000000e+00> : vector<16x8xf32>
    %255 = tpu.matmul %254, %248, %cst_146 {dimension_numbers = #tpu.dot_dimension_numbers<[1], [0], [0], [1], [0, 0, 1, 1], [], []>} : vector<16x8xf32>, vector<8x8xf32>, vector<16x8xf32> -> vector<16x8xf32>
    %256 = vector.extract_strided_slice %255 {offsets = [0, 0], sizes = [8, 8], strides = [1, 1]} : vector<16x8xf32> to vector<8x8xf32>
    %257 = vector.extract_strided_slice %255 {offsets = [8, 0], sizes = [8, 8], strides = [1, 1]} : vector<16x8xf32> to vector<8x8xf32>
    %258 = arith.mulf %256, %257 : vector<8x8xf32>
    %c296 = arith.constant 296 : index
    %c0_147 = arith.constant 0 : index
    %259 = vector.load %arg7[%c296, %c0_147] : memref<328x128xf32, #tpu.memory_space<vmem>>, vector<8x8xf32>
    %cst_148 = arith.constant dense<0.000000e+00> : vector<8x8xf32>
    %260 = tpu.matmul %258, %259, %cst_148 {dimension_numbers = #tpu.dot_dimension_numbers<[1], [0], [0], [1], [0, 0, 1, 1], [], []>} : vector<8x8xf32>, vector<8x8xf32>, vector<8x8xf32> -> vector<8x8xf32>
    %c304 = arith.constant 304 : index
    %c0_149 = arith.constant 0 : index
    %261 = vector.load %arg7[%c304, %c0_149] : memref<328x128xf32, #tpu.memory_space<vmem>>, vector<1x8xf32>
    %262 = vector.broadcast %261 : vector<1x8xf32> to vector<8x8xf32>
    %263 = arith.addf %260, %262 : vector<8x8xf32>
    %cst_150 = arith.constant 0.000000e+00 : f32
    %264 = vector.broadcast %cst_150 : f32 to vector<8x8xf32>
    %265 = arith.maximumf %263, %264 : vector<8x8xf32>
    %c312 = arith.constant 312 : index
    %c0_151 = arith.constant 0 : index
    %266 = vector.load %arg7[%c312, %c0_151] : memref<328x128xf32, #tpu.memory_space<vmem>>, vector<8x128xf32>
    %cst_152 = arith.constant dense<0.000000e+00> : vector<8x128xf32>
    %267 = tpu.matmul %265, %266, %cst_152 {dimension_numbers = #tpu.dot_dimension_numbers<[1], [0], [0], [1], [0, 0, 1, 1], [], []>} : vector<8x8xf32>, vector<8x128xf32>, vector<8x128xf32> -> vector<8x128xf32>
    %c320 = arith.constant 320 : index
    %c0_153 = arith.constant 0 : index
    %268 = vector.load %arg7[%c320, %c0_153] : memref<328x128xf32, #tpu.memory_space<vmem>>, vector<1x128xf32>
    %269 = vector.broadcast %268 : vector<1x128xf32> to vector<8x128xf32>
    %270 = arith.addf %267, %269 : vector<8x128xf32>
    %c0_154 = arith.constant 0 : index
    %c0_155 = arith.constant 0 : index
    %271 = vector.load %arg9[%c0_154, %c0_155] : memref<8x128xf32, #tpu.memory_space<vmem>>, vector<8x128xf32>
    tpu.vector_store %arg9[%c0_154, %c0_155], %270 {strides = array<i32>} : memref<8x128xf32, #tpu.memory_space<vmem>>, vector<8x128xf32>,
    return
  }
}

</mosaic_0001>

<bundles_post_ra>
// kernel: forward.1
= control target key start
LH: loop header
LB: loop body
LE: loop exit
PB: predicated region body
PF: predicated region fallthrough
CT: control target
= control target key end

     0   :  { %16 = vsyncpa [#allocation7], 0  ;;  %s3377_s0 = inlined_call_operand.vmem [shape: f32[2], index: 0, kind: input, shape index: {}]   ;;  %s3378_s1 = inlined_call_operand.<no memory space> [shape: s32[1], index: 1, kind: input, shape index: {}]   ;;  %s3379_s2 = inlined_call_operand.vmem [shape: f32[8,6], index: 2, kind: input, shape index: {}]   ;;  %s3380_s3 = inlined_call_operand.vmem [shape: f32[8,6], index: 3, kind: input, shape index: {}]   ;;  %s3381_s4 = inlined_call_operand.vmem [shape: s32[16,1], index: 4, kind: input, shape index: {}]   ;;  %s3382_s5 = inlined_call_operand.vmem [shape: f32[8,8], index: 5, kind: input, shape index: {}]   ;;  %s3383_s6 = inlined_call_operand.hbm [shape: f32[296,128], index: 6, kind: input, shape index: {}]   ;;  %s3384_s7 = inlined_call_operand.hbm [shape: f32[328,128], index: 7, kind: input, shape index: {}]   ;;  %s3385_s8 = inlined_call_operand.vmem [shape: f32[8,128], index: 8, kind: output, shape index: {0}]   ;;  %s3386_s9 = inlined_call_operand.vmem [shape: f32[8,128], index: 9, kind: output, shape index: {1}]  }
   0x1   :  { %17 = vsyncpa [#allocation6], 0  ;;  %s25_s11 = sshll.u32 %s3377_s0, 4  ;;  %s26_s11 = int_to_ptr.vmem [resolvable:$true] %s25_s11 }
   0x2   :  { %18 = vsyncpa [#allocation10], 0  ;;  %s3005_s12 = scalar_lea.vmem %s26_s11, 16  ;;  %p3010_p1 = scmp.lt.s32.totalorder %s26_s11, %s26_s11 }
   0x3   :  { %p3006_p0 = scmp.ne.s32.totalorder %s26_s11, %s3005_s12  ;;  %p3011_p2 = scmp.lt.s32.totalorder %s3005_s12, %s3005_s12 }
   0x5   :  { %p3012_p3 = por %p3011_p2, %p3010_p1 }
   0x7   :  { %p3013_p4 = pnand %p3012_p3, %p3006_p0 }
   0x9   :  { %3016 = shalt.err (!%p3013_p4)
}
   0xa   :  { %s3085_s13 = smov [#allocation5]   ;;  %s3086_s14 = smov [#allocation8]  }
   0xb   :  { %28 = dma.vmem_to_smem %s26_s11, 16, %s3085_s13, [#allocation7]  }
   0xc   :  { %s42_s15 = sshll.u32 %s3086_s14, 4  ;;  %s3017_s18 = scalar_lea.hbm %s3383_s6, 4736  ;;  %s43_s15 = int_to_ptr.vmem [resolvable:$true] %s42_s15 }
   0xd   :  { %p3018_p5 = scmp.ne.s32.totalorder %s3383_s6, %s3017_s18  ;;  %p3021_p6 = scmp.lt.u32.totalorder %s3017_s18, %s3383_s6 }
   0xf   :  { %p3023_p7 = pnand %p3021_p6, %p3018_p5 }
  0x11   :  { %3026 = shalt.err (!%p3023_p7)
}
  0x12   :  { %s3027_s22 = scalar_lea.vmem %s43_s15, 4736  ;;  %p3032_p9 = scmp.lt.s32.totalorder %s43_s15, %s43_s15 }
  0x13   :  { %p3028_p8 = scmp.ne.s32.totalorder %s43_s15, %s3027_s22  ;;  %p3033_p10 = scmp.lt.s32.totalorder %s3027_s22, %s3027_s22 }
  0x15   :  { %p3034_p11 = por %p3033_p10, %p3032_p9 }
  0x17   :  { %p3035_p12 = pnand %p3034_p11, %p3028_p8 }
  0x19   :  { %3038 = shalt.err (!%p3035_p12)
}
  0x1a   :  { %s3087_s23 = smov 128   ;;  %s3088_s24 = smov 8  }
  0x1b   :  { %48 = dma.hbm_to_vmem [thread:$0]  %s3383_s6, 4736, %s43_s15, [#allocation6], %s3087_s23, %s3087_s23, %s3088_s24  }
  0x1c   :  { %s3089_s27 = smov [#allocation9]   ;;  %s3039_s10 = scalar_lea.hbm %s3384_s7, 5248 }
  0x1d   :  { %s54_s28 = sshll.u32 %s3089_s27, 4  ;;  %p3040_p13 = scmp.ne.s32.totalorder %s3384_s7, %s3039_s10  ;;  %s55_s28 = int_to_ptr.vmem [resolvable:$true] %s54_s28 }
  0x1e   :  { %p3043_p0 = scmp.lt.u32.totalorder %s3039_s10, %s3384_s7 }
  0x20   :  { %p3045_p1 = pnand %p3043_p0, %p3040_p13 }
  0x22   :  { %3048 = shalt.err (!%p3045_p1)
}
  0x23   :  { %s3049_s16 = scalar_lea.vmem %s55_s28, 5248  ;;  %p3054_p3 = scmp.lt.s32.totalorder %s55_s28, %s55_s28 }
  0x24   :  { %p3050_p2 = scmp.ne.s32.totalorder %s55_s28, %s3049_s16  ;;  %p3055_p4 = scmp.lt.s32.totalorder %s3049_s16, %s3049_s16 }
  0x26   :  { %p3056_p5 = por %p3055_p4, %p3054_p3 }
  0x28   :  { %p3057_p6 = pnand %p3056_p5, %p3050_p2 }
  0x2a   :  { %3060 = shalt.err (!%p3057_p6)
}
  0x2b   :  { %60 = dma.hbm_to_vmem [thread:$0]  %s3384_s7, 5248, %s55_s28, [#allocation10], %s3087_s23, %s3087_s23, %s3088_s24  }
  0x2c   :  { %3069 = dma.done.wait [#allocation7], 16  }
  0x2d   :  { %3070 = vsyncadd [#allocation7], 4294967280 }
  0x2e   :  { %3071 = dma.done.wait [#allocation6], 4736  }
  0x2f   :  { %3072 = vsyncadd [#allocation6], 4294962560 }
  0x30   :  { %3073 = dma.done.wait [#allocation10], 5248  }
  0x31   :  { %3074 = vsyncadd [#allocation10], 4294962048 }
  0x32   :  { %70 = sfence }
  0x33   :  { %p2559_p7 = scmp.eq.s32.totalorder %s3378_s1, 0 }
  0x34   :  { %v108_v0 = vld [vmem:[%s3382_s5] sm:$0xff] (!%p2559_p7) }
  0x35   :  { %75 = sbr.rel (%p2559_p7) target bundleno = 61 (0x3d), region = 45  ;;  %109 = vst [vmem:[#allocation2] sm:$0xff] (!%p2559_p7), %v108_v0 }
  0x3c   :  { %117 = vsyncadd [#allocation3], 128 }
  0x3d PF:  { %v203_v1 = vld [vmem:[#allocation8 + $0x20] sm:$0x3f]  ;;  %vm213_vm0 = vcmask 1045504   ;;  %v119_v2 = vld [vmem:[%s3379_s2] sm:$0xff]  ;;  %v3090_v3 = vmov 0.0   ;;  %vm3091_vm1 = vmmov 0   ;;  %v447_v42 = vlaneseq }
  0x3e   :  { %2702 = vmatprep.subr.mxu1 %v3090_v3  ;;  %2704 = vmatprep.mubr.msk.f32.mxu1 %vm3091_vm1, %v3090_v3  ;;  %vm209_vm2 = vcmask 48128   ;;  %v126_v4 = vld [vmem:[#allocation8 + $0x10] sm:$0xff]  ;;  %s118_s23 = sld [smem:[#allocation5]]  ;;  %v120_v5 = vld [vmem:[#allocation8] sm:$0x1]  ;;  %vm128_vm3 = vcmask 64512  }
  0x3f   :  { %2703 = vmatpush3.msk.msra.mxu1 %vm213_vm0, %v203_v1  ;;  %2697 = vmatprep.subr.mxu0 %v3090_v3  ;;  %v123_v7 = vld [vmem:[#allocation8 + $0x8] sm:$0x1]  ;;  %v288_v11 = vld [vmem:[#allocation8 + $0x30] sm:$0xff]  ;;  %v289_v12 = vld [vmem:[#allocation8 + $0x38] sm:$0xff]  ;;  %v3092_v14 = vmov 0.0|0.0   ;;  %vm295_vm4 = vcmask 130048  }
  0x40   :  { %2705 = vmatmul.mubr.msk.f32.vlgmr.msra.gmra.mrb[0].mxu1 %vm209_vm2, %v119_v2  ;;  %2698 = vmatpush3.msra.mxu0 %v126_v4  ;;  %v2891_v13 = vpack.c.bf16 %v289_v12, %v288_v11  ;;  %v370_v15 = vld [vmem:[#allocation8 + $0x58] sm:$0xff]  ;;  %v2561_v16 = vld [vmem:[#allocation8 + $0x28] ss:$0 sm:$0xff]  ;;  %v446_v29 = vld [vmem:[#allocation8 + $0x50] sm:$0xff]  ;;  %v448_v43 = vshrl.u32 %v447_v42, 7  ;;  %vm1039_vm5 = vcmask 457728  }
  0x41   :  { %2699 = vmatprep.mubr.msk.f32.mxu0 %vm3091_vm1, %v3090_v3  ;;  %2714 = vmatprep.subr.mxu1 %v3090_v3  ;;  %v127_v21 = vld [vmem:[#allocation8 + $0x18] sm:$0x1]  ;;  %v551_v26 = vld [vmem:[#allocation8 + $0x88] sm:$0xff]  ;;  %v2564_v31 = vld [vmem:[#allocation8 + $0x40] ss:$0 sm:$0xff]  ;;  %s2580_s24 = sld [smem:[#allocation5 + $0x1]] }
  0x42   :  { %2716 = vmatprep.mubr.msk.f32.mxu1 %vm3091_vm1, %v3090_v3  ;;  %2890 = vmatprep.subr.bf16.mxu0 %v3092_v14  ;;  %v728_v27 = vld [vmem:[#allocation8 + $0xd8] sm:$0xff]  ;;  %v445_v28 = vld [vmem:[#allocation8 + $0x48] sm:$0xff]  ;;  %v371_v44 = vld [vmem:[#allocation8 + $0x60] sm:$0x1]  ;;  %v3226_v46 = vsub.s32 0, %v448_v43 }
  0x43   :  { %2715 = vmatpush3.msra.mxu1 %v370_v15  ;;  %v2894_v30 = vpack.c.bf16 %v446_v29, %v445_v28  ;;  %v623_v58 = vld [vmem:[#allocation8 + $0x78] sm:$0xff]  ;;  %v624_v59 = vld [vmem:[#allocation8 + $0x80] sm:$0xff]  ;;  %v2568_v1 = vld [vmem:[#allocation8 + $0x68] ss:$0 sm:$0xff] }
  0x44   :  { %v121_v6 = vstv %s118_s23  ;;  %2726 = vmatprep.subr.mxu1 %v3090_v3  ;;  %v2897_v60 = vpack.c.bf16 %v624_v59, %v623_v58  ;;  %v800_v4 = vld [vmem:[#allocation8 + $0xa8] sm:$0xff]  ;;  %v878_v11 = vld [vmem:[#allocation8 + $0xc0] sm:$0xff]  ;;  %v951_v28 = vld [vmem:[#allocation8 + $0xd0] sm:$0xff] }
  0x45   :  { %v122_v8 = vmul.f32 %v121_v6, %v120_v5  ;;  %v801_v5 = vld [vmem:[#allocation8 + $0xb0] sm:$0xff]  ;;  %v1198_v59 = vld [vmem:[#allocation9 + $0x20] sm:$0x3f] }
  0x46   :  { %v2569_v6 = vld [vmem:[#allocation8 + $0x70] ss:$0 sm:$0xff] }
  0x47   :  { %v124_v9 = vadd.f32 %v123_v7, %v122_v8  ;;  %v2900_v8 = vpack.c.bf16 %v801_v5, %v800_v4  ;;  %v1281_v4 = vld [vmem:[#allocation9 + $0x30] sm:$0xff]  ;;  %v1282_v5 = vld [vmem:[#allocation9 + $0x38] sm:$0xff] }
  0x49   :  { %v125_v10 = vmax.f32 %v124_v9, 0.0 }
  0x4b   :  { %2700 = vmatmul.mubr.msk.f32.vlgmr.msra.gmra.mrb[0].mxu0 %vm128_vm3, %v125_v10  ;;  %v877_v10 = vld [vmem:[#allocation8 + $0xb8] sm:$0xff] }
  0x4c   :  { %2711 = vmatprep.mubr.msk.f32.mxu0 %vm3091_vm1, %v3090_v3  ;;  %2892 = vmatpush3.bf16.msra.mxu0 %v2891_v13  ;;  %v2903_v12 = vpack.c.bf16 %v878_v11, %v877_v10  ;;  %v552_v13 = vld [vmem:[#allocation8 + $0x90] sm:$0x1] }
  0x4d   :  { %2893 = vmatprep.subr.bf16.mxu0 %v3092_v14  ;;  %v2582_v11 = vld [vmem:[#allocation9 + $0x28] ss:$0 sm:$0xff] }
 0x113   :  { %v283_v17 = vpop.f32.mrb[0].mxu1 }
 0x114   :  { %v284_v18 = vadd.f32 %v2561_v16, %v283_v17  ;;  %v2706_v19 = vpop.f32.mrb[1].mxu1 }
 0x116   :  { %v287_v20 = vmax.f32 %v284_v18, 0.0 }
 0x118   :  { %2712 = vmatmul.mubr.msk.f32.vlgmr.msra.gmra.mrb[2].mxu0 %vm295_vm4, %v287_v20 }
 0x119   :  { %2723 = vmatprep.mubr.msk.f32.mxu0 %vm3091_vm1, %v3090_v3  ;;  %2895 = vmatpush3.bf16.msra.mxu0 %v2894_v30  ;;  %v1027_v30 = vld [vmem:[#allocation8 + $0xe8] sm:$0xff] }
 0x11a   :  { %2896 = vmatprep.subr.bf16.mxu0 %v3092_v14 }
 0x11e   :  { %v198_v22 = vpop.f32.mrb[0].mxu0 }
 0x11f   :  { %v199_v23 = vadd.f32 %v198_v22, %v127_v21  ;;  %v2701_v24 = vpop.f32.mrb[1].mxu0 }
 0x121   :  { %v202_v25 = vmax.f32 %v199_v23, 0.0 }
 0x123   :  { %2717 = vmatmul.mubr.msk.f32.vlgmr.msra.gmra.mrb[2].mxu1 %vm128_vm3, %v202_v25 }
 0x124   :  { %2727 = vmatpush3.msra.mxu1 %v551_v26  ;;  %2728 = vmatprep.mubr.msk.f32.mxu1 %vm3091_vm1, %v3090_v3 }
 0x125   :  { %2738 = vmatprep.subr.mxu1 %v3090_v3 }
 0x127   :  { %2729 = vmatmul.mubr.msk.f32.vlgmr.msra.gmra.mrb[4].mxu1 %vm128_vm3, %v202_v25 }
 0x128   :  { %2739 = vmatpush3.msra.mxu1 %v728_v27  ;;  %2740 = vmatprep.mubr.msk.f32.mxu1 %vm3091_vm1, %v3090_v3  ;;  %v950_v27 = vld [vmem:[#allocation8 + $0xc8] sm:$0xff] }
 0x129   :  { %2908 = vmatprep.subr.bf16.mxu1 %v3092_v14  ;;  %v2906_v29 = vpack.c.bf16 %v951_v28, %v950_v27  ;;  %v3077_v27 = vmov 0  }
 0x12b   :  { %2741 = vmatmul.mubr.msk.f32.vlgmr.msra.gmra.mrb[6].mxu1 %vm128_vm3, %v202_v25 }
 0x12c   :  { %2778 = vmatprep.mubr.msk.f32.mxu1 %vm3091_vm1, %v3090_v3 }
 0x1eb   :  { %v365_v32 = vpop.f32.mrb[2].mxu0 }
 0x1ec   :  { %v366_v33 = vadd.f32 %v2564_v31, %v365_v32  ;;  %v2713_v34 = vpop.f32.mrb[3].mxu0  ;;  %v1028_v31 = vld [vmem:[#allocation8 + $0xf0] sm:$0xff]  ;;  %v1029_v32 = vld [vmem:[#allocation8 + $0xf8] sm:$0xff] }
 0x1ed   :  { %v1030_v34 = vld [vmem:[#allocation8 + $0x100] sm:$0xff] }
 0x1ee   :  { %v369_v35 = vmax.f32 %v366_v33, 0.0  ;;  %v2909_v33 = vpack.c.bf16 %v1028_v31, %v1027_v30 }
 0x1f0   :  { %2724 = vmatmul.mubr.msk.f32.vlgmr.msra.gmra.mrb[4].mxu0 %vm295_vm4, %v369_v35  ;;  %2910 = vmatpush3.bf16.msra.mxu1 %v2909_v33 }
 0x1f1   :  { %2735 = vmatprep.mubr.msk.f32.mxu0 %vm3091_vm1, %v3090_v3  ;;  %2898 = vmatpush3.bf16.msra.mxu0 %v2897_v60  ;;  %v1115_v60 = vld [vmem:[%s3380_s3] sm:$0xff] }
 0x1f2   :  { %2899 = vmatprep.subr.bf16.mxu0 %v3092_v14  ;;  %2911 = vmatprep.subr.bf16.mxu1 %v3092_v14 }
 0x1f6   :  { %v441_v36 = vpop.f32.mrb[2].mxu1 }
 0x1f7   :  { %v2718_v37 = vpop.f32.mrb[3].mxu1  ;;  %v442_v45 = vadd.f32 %v441_v36, %v371_v44  ;;  %v1031_v36 = vld [vmem:[#allocation8 + $0x108] sm:$0xff] }
 0x1f8   :  { %v1032_v37 = vld [vmem:[#allocation8 + $0x110] sm:$0xff] }
 0x1f9   :  { %v450_v47 = vrot.slane %v442_v45, %v3226_v46  ;;  %v2572_v45 = vld [vmem:[#allocation8 + $0x98] ss:$0 sm:$0xff] }
 0x1fa   :  { %v619_v38 = vpop.f32.mrb[4].mxu1 }
 0x1fb   :  { %v2730_v39 = vpop.f32.mrb[5].mxu1  ;;  %v620_v15 = vadd.f32 %v619_v38, %v552_v13  ;;  %v2915_v38 = vpack.c.bf16 %v1032_v37, %v1031_v36 }
 0x1fd   :  { %v628_v16 = vrot.slane %v620_v15, %v3226_v46 }
 0x1fe   :  { %v3223_v40 = vpop.f32.mrb[6].mxu1 }
 0x1ff   :  { %v2742_v41 = vpop.f32.mrb[7].mxu1 }
 0x2c3   :  { %v520_v48 = vpop.f32.mrb[4].mxu0 }
 0x2c4   :  { %v521_v49 = vadd.f32 %v520_v48, %v450_v47  ;;  %v2725_v50 = vpop.f32.mrb[5].mxu0  ;;  %v2573_v48 = vld [vmem:[#allocation8 + $0xa0] ss:$0 sm:$0xff] }
 0x2c6   :  { %v524_v51 = vmax.f32 %v521_v49, 0.0 }
 0x2c8   :  { %v525_v52 = vsel %vm295_vm4, %v524_v51, 0.0 }
 0x2c9   :  { %526 = vadd.xlane.f32.xlu0 %v525_v52  ;;  %v729_v52 = vld [vmem:[#allocation8 + $0xe0] sm:$0x1] }
 0x356   :  { %v527_v53 = vpop.xlane.xlu0 %526 }
 0x357   :  { %v529_v54 = vmul.f32 0.0625, %v527_v53  ;;  %v797_v53 = vadd.f32 %v3223_v40, %v729_v52  ;;  %v1116_v40 = vld [vmem:[#allocation9] sm:$0x1] }
 0x359   :  { %v530_v55 = vsub.f32 %v524_v51, %v529_v54  ;;  %v1033_v51 = vld [vmem:[#allocation8 + $0x118] sm:$0xff]  ;;  %v875_v54 = vrot.slane %v797_v53, %v3226_v46 }
 0x35b   :  { %v531_v56 = vmul.f32 %v530_v55, %v530_v55 }
 0x35d   :  { %v532_v57 = vsel %vm295_vm4, %v531_v56, 0.0 }
 0x35e   :  { %533 = vadd.xlane.f32.xlu0 %v532_v57 }
 0x3eb   :  { %v534_v61 = vpop.xlane.xlu0 %533 }
 0x3ec   :  { %v535_v62 = vmul.f32 0.0625, %v534_v61  ;;  %v1117_v61 = vstv %s2580_s24 }
 0x3ee   :  { %v536_v63 = vadd.f32 1e-05, %v535_v62  ;;  %v1118_v62 = vmul.f32 %v1117_v61, %v1116_v40 }
 0x3f0   :  { %2995 = vrsqrt.f32 %v536_v63  ;;  %v1119_v63 = vld [vmem:[#allocation9 + $0x8] sm:$0x1] }
 0x3fa   :  { %v2996_v0 = vpop.eup %2995 }
 0x3fb   :  { %v538_v2 = vmul.f32 %v2996_v0, %v530_v55  ;;  %v1120_v0 = vadd.f32 %v1119_v63, %v1118_v62 }
 0x3fd   :  { %v544_v7 = vmul.f32 %v2568_v1, %v538_v2  ;;  %v1122_v1 = vld [vmem:[#allocation9 + $0x10] sm:$0xff]  ;;  %v1121_v2 = vmax.f32 %v1120_v0, 0.0 }
 0x3ff   :  { %v550_v9 = vadd.f32 %v2569_v6, %v544_v7  ;;  %v2918_v6 = vpack.c.bf16 %v1282_v5, %v1281_v4  ;;  %v2578_v7 = vld [vmem:[#allocation8 + $0x120] ss:$0 sm:$0xff] }
 0x401   :  { %2736 = vmatmul.mubr.msk.f32.vlgmr.msra.gmra.mrb[6].mxu0 %vm295_vm4, %v550_v9 }
 0x402   :  { %2901 = vmatpush3.bf16.msra.mxu0 %v2900_v8  ;;  %2747 = vmatprep.mubr.msk.f32.mxu0 %vm3091_vm1, %v3090_v3 }
 0x403   :  { %2902 = vmatprep.subr.bf16.mxu0 %v3092_v14 }
 0x405   :  { %2748 = vmatmul.mubr.msk.f32.vlgmr.msra.gmra.mrb[8].mxu0 %vm295_vm4, %v369_v35  ;;  %v2912_v35 = vpack.c.bf16 %v1030_v34, %v1029_v32 }
 0x406   :  { %2904 = vmatpush3.bf16.msra.mxu0 %v2903_v12  ;;  %2754 = vmatprep.mubr.msk.f32.mxu0 %vm3091_vm1, %v3090_v3 }
 0x407   :  { %2905 = vmatprep.subr.bf16.mxu0 %v3092_v14  ;;  %2913 = vmatpush3.bf16.msra.mxu1 %v2912_v35 }
 0x408   :  { %2914 = vmatprep.subr.bf16.mxu1 %v3092_v14 }
 0x40b   :  { %2916 = vmatpush3.bf16.msra.mxu1 %v2915_v38 }
 0x40c   :  { %2776 = vmatprep.subr.mxu1 %v3090_v3 }
 0x40d   :  { %2755 = vmatmul.mubr.msk.f32.vlgmr.msra.gmra.mrb[8].mxu0 %vm295_vm4, %v550_v9 }
 0x40e   :  { %2761 = vmatprep.mubr.msk.f32.mxu0 %vm3091_vm1, %v3090_v3  ;;  %2907 = vmatpush3.bf16.msra.mxu0 %v2906_v29 }
 0x40f   :  { %2781 = vmatprep.subr.mxu0 %v3090_v3  ;;  %2777 = vmatpush3.msra.mxu1 %v1033_v51 }
 0x410   :  { %2786 = vmatprep.subr.mxu1 %v3090_v3 }
 0x4d4   :  { %v698_v17 = vpop.f32.mrb[6].mxu0 }
 0x4d5   :  { %v699_v18 = vadd.f32 %v698_v17, %v628_v16  ;;  %v2737_v19 = vpop.f32.mrb[7].mxu0  ;;  %v1123_v17 = vld [vmem:[#allocation9 + $0x18] sm:$0x1] }
 0x4d7   :  { %v702_v20 = vmax.f32 %v699_v18, 0.0 }
 0x4d9   :  { %v703_v21 = vsel %vm295_vm4, %v702_v20, 0.0 }
 0x4da   :  { %704 = vadd.xlane.f32.xlu1 %v703_v21 }
 0x567   :  { %v705_v22 = vpop.xlane.xlu1 %704 }
 0x568   :  { %v706_v23 = vmul.f32 0.0625, %v705_v22  ;;  %v2585_v22 = vld [vmem:[#allocation9 + $0x40] ss:$0 sm:$0xff] }
 0x56a   :  { %v707_v24 = vsub.f32 %v702_v20, %v706_v23 }
 0x56c   :  { %v708_v25 = vmul.f32 %v707_v24, %v707_v24 }
 0x56e   :  { %v709_v26 = vsel %vm295_vm4, %v708_v25, 0.0 }
 0x56f   :  { %710 = vadd.xlane.f32.xlu1 %v709_v26 }
 0x5fc   :  { %v711_v39 = vpop.xlane.xlu1 %710 }
 0x5fd   :  { %v712_v41 = vmul.f32 0.0625, %v711_v39 }
 0x5ff   :  { %v713_v43 = vadd.f32 1e-05, %v712_v41 }
 0x601   :  { %2997 = vrsqrt.f32 %v713_v43 }
 0x60b   :  { %v2998_v44 = vpop.eup %2997 }
 0x60c   :  { %v715_v47 = vmul.f32 %v2998_v44, %v707_v24 }
 0x60e   :  { %v721_v49 = vmul.f32 %v2572_v45, %v715_v47 }
 0x610   :  { %v727_v50 = vadd.f32 %v2573_v48, %v721_v49 }
 0x612   :  { %2762 = vmatmul.mubr.msk.f32.vlgmr.msra.gmra.mrb[8].mxu0 %vm295_vm4, %v727_v50 }
 0x613   :  { %2783 = vmatprep.mubr.msk.f32.mxu0 %vm3091_vm1, %v3090_v3  ;;  %2782 = vmatpush3.msra.mxu0 %v1122_v1 }
 0x614   :  { %2917 = vmatprep.subr.bf16.mxu0 %v3092_v14 }
 0x616   :  { %2784 = vmatmul.mubr.msk.f32.vlgmr.msra.gmra.mrb[10].mxu0 %vm128_vm3, %v1121_v2 }
 0x617   :  { %2795 = vmatprep.mubr.msk.f32.mxu0 %vm3091_vm1, %v3090_v3  ;;  %2919 = vmatpush3.bf16.msra.mxu0 %v2918_v6 }
 0x6e5   :  { %v1021_v55 = vpop.f32.mrb[8].mxu0 }
 0x6e6   :  { %v2944_v56 = vadd.f32 %v1021_v55, %v875_v54  ;;  %v2763_v57 = vpop.f32.mrb[9].mxu0 }
 0x6e8   :  { %v1026_v58 = vmax.f32 %v2944_v56, 0.0 }
 0x6e9   :  { %v1193_v18 = vpop.f32.mrb[10].mxu0 }
 0x6ea   :  { %2779 = vmatmul.mubr.msk.f32.vlgmr.msra.gmra.mrb[8].mxu1 %vm1039_vm5, %v1026_v58  ;;  %v1194_v19 = vadd.f32 %v1193_v18, %v1123_v17  ;;  %v2785_v20 = vpop.f32.mrb[11].mxu0 }
 0x6eb   :  { %2787 = vmatpush3.msk.msra.mxu1 %vm213_vm0, %v1198_v59  ;;  %2788 = vmatprep.mubr.msk.f32.mxu1 %vm3091_vm1, %v3090_v3 }
 0x6ec   :  { %v3272_v21 = vmax.f32 %v1194_v19, 0.0 }
 0x6ee   :  { %2789 = vmatmul.mubr.msk.f32.vlgmr.msra.gmra.mrb[10].mxu1 %vm209_vm2, %v1115_v60 }
 0x7bd   :  { %v1109_v8 = vpop.f32.mrb[8].mxu1 }
 0x7be   :  { %v1110_v9 = vadd.f32 %v2578_v7, %v1109_v8  ;;  %v2780_v10 = vpop.f32.mrb[9].mxu1 }
 0x7c0   :  { %1113 = vst [vmem:[%s3385_s8] sm:$0xff] %v1110_v9 }
 0x7c1   :  { %v1276_v12 = vpop.f32.mrb[10].mxu1 }
 0x7c2   :  { %v1277_v13 = vadd.f32 %v2582_v11, %v1276_v12  ;;  %v2790_v15 = vpop.f32.mrb[11].mxu1 }
 0x7c4   :  { %v1280_v16 = vmax.f32 %v1277_v13, 0.0 }
 0x7c6   :  { %2796 = vmatmul.mubr.msk.f32.vlgmr.msra.gmra.mrb[12].mxu0 %vm295_vm4, %v1280_v16 }
 0x896   :  { %1364 = sbr.rel (%p2559_p7) target bundleno = 2422 (0x976), region = 83 }
 0x899   :  { %v1357_v23 = vpop.f32.mrb[12].mxu0 }
 0x89a   :  { %v1358_v24 = vadd.f32 %v2585_v22, %v1357_v23  ;;  %v2797_v25 = vpop.f32.mrb[13].mxu0 }
 0x89c   :  { %v3274_v26 = vmax.f32 %v1358_v24, 0.0 }
 0x89d   :  { %3075 = dma.done.wait [#allocation3], 128 }
 0x89e   :  { %3076 = vsyncadd [#allocation3], 4294967168  ;;  %v3093_v28 = vmov 0.0   ;;  %vm3094_vm6 = vmmov 0   ;;  %v1368_v29 = vld [vmem:[#allocation2] sm:$0xff] }
 0x89f   :  { %2798 = vmatprep.subr.mxu0 %v3093_v28  ;;  %2800 = vmatprep.mubr.msk.f32.mxu0 %vm3094_vm6, %v3093_v28 }
 0x8a0   :  { %2799 = vmatpush3.msra.mxu0 %v3274_v26 }
 0x8a1   :  { %2801 = vmatmul.mubr.msk.f32.vlgmr.msra.gmra.mrb[0].mxu0 %vm128_vm3, %v1368_v29 }
 0x974   :  { %v1438_v27 = vpop.f32.mrb[0].mxu0  }
 0x975   :  { %v2802_v30 = vpop.f32.mrb[1].mxu0 }
 0x976 PF:  { %2803 = vmatprep.subr.mxu0 %v3090_v3  ;;  %2805 = vmatprep.mubr.msk.f32.mxu0 %vm3091_vm1, %v3090_v3  ;;  %s2955_s29 = scalar_select %p2559_p7, 1, 0  ;;  %v3081_v0 = vmov 0   ;;  %v3095_v2 = vmov (!%p2559_p7), 0.0   ;;  %vm3096_vm8 = vmmov (!%p2559_p7), 0   ;;  %v3079_v27 = vphi %v3077_v27, %v1438_v27  }
 0x977   :  { %v1447_v31 = vld [vmem:[#allocation9 + $0x58] sm:$0xff]  ;;  %v1522_v32 = vld [vmem:[#allocation9 + $0x48] sm:$0xff]  ;;  %v1523_v33 = vld [vmem:[#allocation9 + $0x50] sm:$0xff]  ;;  %2920 = vmatprep.subr.bf16.mxu1 %v3092_v14  ;;  %2812 = vmatprep.mubr.msk.f32.mxu1 %vm3091_vm1, %v3090_v3 }
 0x978   :  { %2804 = vmatpush3.msra.mxu0 %v1447_v31  ;;  %v2921_v34 = vpack.c.bf16 %v1523_v33, %v1522_v32  ;;  %v2956_v35 = vstv %s2955_s29  ;;  %v1448_v38 = vld [vmem:[#allocation9 + $0x60] sm:$0x1]  ;;  %v2591_v60 = vld [vmem:[#allocation9 + $0x68] ss:$0 sm:$0xff]  ;;  %v2592_v61 = vld [vmem:[#allocation9 + $0x70] ss:$0 sm:$0xff] }
 0x979   :  { %2806 = vmatmul.mubr.msk.f32.vlgmr.msra.gmra.mrb[0].mxu0 %vm128_vm3, %v3272_v21  ;;  %vm3294_vm7 = vcmp.ne.s32.totalorder %v2956_v35, 0  ;;  %v1630_v1 = vld [vmem:[#allocation2] sm:$0xff] (!%p2559_p7)  ;;  %2815 = vmatprep.subr.mxu0 (!%p2559_p7), %v3095_v2 }
 0x97a   :  { %2922 = vmatpush3.bf16.msra.mxu1 %v2921_v34  ;;  %v2958_v37 = vsel %vm3294_vm7, %v3274_v26, %v3079_v27  ;;  %2817 = vmatprep.mubr.msk.f32.mxu0 (!%p2559_p7), %vm3096_vm8, %v3095_v2 }
 0x97d   :  { %2813 = vmatmul.mubr.msk.f32.vlgmr.msra.gmra.mrb[0].mxu1 %vm295_vm4, %v2958_v37 }
 0xa4c   :  { %v1518_v39 = vpop.f32.mrb[0].mxu0 }
 0xa4d   :  { %v1519_v41 = vadd.f32 %v1518_v39, %v1448_v38  ;;  %v2807_v43 = vpop.f32.mrb[1].mxu0 }
 0xa4f   :  { %v1527_v44 = vrot.slane %v1519_v41, %v3226_v46 }
 0xa50   :  { %v1597_v45 = vpop.f32.mrb[0].mxu1 }
 0xa51   :  { %v1598_v47 = vadd.f32 %v1597_v45, %v1527_v44  ;;  %v2814_v48 = vpop.f32.mrb[1].mxu1 }
 0xa53   :  { %v1601_v49 = vmax.f32 %v1598_v47, 0.0 }
 0xa55   :  { %v1602_v50 = vsel %vm295_vm4, %v1601_v49, 0.0 }
 0xa56   :  { %1603 = vadd.xlane.f32.xlu0 %v1602_v50 }
 0xae3   :  { %v1604_v51 = vpop.xlane.xlu0 %1603 }
 0xae4   :  { %v1605_v52 = vmul.f32 0.0625, %v1604_v51 }
 0xae6   :  { %v1606_v53 = vsub.f32 %v1601_v49, %v1605_v52 }
 0xae8   :  { %v1607_v54 = vmul.f32 %v1606_v53, %v1606_v53 }
 0xaea   :  { %v1608_v55 = vsel %vm295_vm4, %v1607_v54, 0.0 }
 0xaeb   :  { %1609 = vadd.xlane.f32.xlu0 %v1608_v55 }
 0xb78   :  { %v1610_v56 = vpop.xlane.xlu0 %1609 }
 0xb79   :  { %v1611_v57 = vmul.f32 0.0625, %v1610_v56 }
 0xb7b   :  { %v1612_v58 = vadd.f32 1e-05, %v1611_v57 }
 0xb7d   :  { %2999 = vrsqrt.f32 %v1612_v58 }
 0xb86   :  { %1629 = sbr.rel (%p2559_p7) target bundleno = 3172 (0xc64), region = 91 }
 0xb87   :  { %v3000_v59 = vpop.eup %2999 }
 0xb88   :  { %v1614_v40 = vmul.f32 %v3000_v59, %v1606_v53 }
 0xb8a   :  { %v1620_v62 = vmul.f32 %v2591_v60, %v1614_v40 }
 0xb8c   :  { %v3305_v63 = vadd.f32 %v2592_v61, %v1620_v62 }
 0xb8e   :  { %2816 = vmatpush3.msra.mxu0 %v3305_v63 }
 0xb8f   :  { %2818 = vmatmul.mubr.msk.f32.vlgmr.msra.gmra.mrb[0].mxu0 %vm128_vm3, %v1630_v1 }
 0xc62   :  { %v1700_v0 = vpop.f32.mrb[0].mxu0  }
 0xc63   :  { %v2819_v4 = vpop.f32.mrb[1].mxu0 }
 0xc64 PF:  { %2820 = vmatprep.subr.mxu0 %v3090_v3  ;;  %v1709_v5 = vld [vmem:[#allocation9 + $0x88] sm:$0xff]  ;;  %2822 = vmatprep.mubr.msk.f32.mxu0 %vm3091_vm1, %v3090_v3  ;;  %v1781_v6 = vld [vmem:[#allocation9 + $0x78] sm:$0xff]  ;;  %v1782_v7 = vld [vmem:[#allocation9 + $0x80] sm:$0xff]  ;;  %v2963_v9 = vsel %vm3294_vm7, %v3305_v63, %v3083_v0  ;;  %v3097_v60 = vmov 0   ;;  %v3083_v0 = vphi %v3081_v0, %v1700_v0  }
 0xc65   :  { %2821 = vmatpush3.msra.mxu0 %v1709_v5  ;;  %2923 = vmatprep.subr.bf16.mxu1 %v3092_v14  ;;  %v2924_v8 = vpack.c.bf16 %v1782_v7, %v1781_v6  ;;  %v1710_v10 = vld [vmem:[#allocation9 + $0x90] sm:$0x1]  ;;  %v1958_v28 = vld [vmem:[#allocation9 + $0xa8] sm:$0xff]  ;;  %v2038_v31 = vld [vmem:[#allocation9 + $0xb8] sm:$0xff]  ;;  %v2277_v5 = vand.u32 127, %v447_v42 }
 0xc66   :  { %2823 = vmatmul.mubr.msk.f32.vlgmr.msra.gmra.mrb[0].mxu0 %vm128_vm3, %v3272_v21  ;;  %2829 = vmatprep.mubr.msk.f32.mxu1 %vm3091_vm1, %v3090_v3  ;;  %v1959_v29 = vld [vmem:[#allocation9 + $0xb0] sm:$0xff]  ;;  %v2039_v32 = vld [vmem:[#allocation9 + $0xc0] sm:$0xff]  ;;  %v1886_v33 = vld [vmem:[#allocation9 + $0xd8] sm:$0xff] }
 0xc67   :  { %2925 = vmatpush3.bf16.msra.mxu1 %v2924_v8  ;;  %2832 = vmatprep.subr.mxu0 %v3090_v3  ;;  %v2927_v30 = vpack.c.bf16 %v1959_v29, %v1958_v28  ;;  %v2930_v34 = vpack.c.bf16 %v2039_v32, %v2038_v31  ;;  %v2114_v35 = vld [vmem:[#allocation9 + $0xc8] sm:$0xff]  ;;  %v2115_v36 = vld [vmem:[#allocation9 + $0xd0] sm:$0xff]  ;;  %v2193_v39 = vld [vmem:[#allocation9 + $0xf8] sm:$0xff] }
 0xc68   :  { %2926 = vmatprep.subr.bf16.mxu1 %v3092_v14  ;;  %2834 = vmatprep.mubr.msk.f32.mxu0 %vm3091_vm1, %v3090_v3  ;;  %v2933_v37 = vpack.c.bf16 %v2115_v36, %v2114_v35  ;;  %v2194_v41 = vld [vmem:[#allocation9 + $0x100] sm:$0xff]  ;;  %v2597_v49 = vld [vmem:[#allocation9 + $0x98] ss:$0 sm:$0xff]  ;;  %v2195_v56 = vld [vmem:[#allocation9 + $0x108] sm:$0xff] }
 0xc69   :  { %2833 = vmatpush3.msra.mxu0 %v1886_v33  ;;  %v2939_v43 = vpack.c.bf16 %v2194_v41, %v2193_v39  ;;  %v2598_v51 = vld [vmem:[#allocation9 + $0xa0] ss:$0 sm:$0xff]  ;;  %v2196_v57 = vld [vmem:[#allocation9 + $0x110] sm:$0xff]  ;;  %3001 = vset.pattern.permute.xlu1 %v3097_v60  ;;  %v2279_v40 = vld [vmem:[%s3381_s4 + $0x8] sm:$0xff] }
 0xc6a   :  { %2830 = vmatmul.mubr.msk.f32.vlgmr.msra.gmra.mrb[0].mxu1 %vm295_vm4, %v2963_v9  ;;  %2835 = vmatmul.mubr.msk.f32.vlgmr.msra.gmra.mrb[2].mxu0 %vm128_vm3, %v3272_v21  ;;  %v2192_v21 = vld [vmem:[#allocation9 + $0xf0] sm:$0xff]  ;;  %v2942_v58 = vpack.c.bf16 %v2196_v57, %v2195_v56  ;;  %v1887_v61 = vld [vmem:[#allocation9 + $0xe0] sm:$0x1] }
 0xc6b   :  { %2841 = vmatprep.mubr.msk.f32.mxu1 %vm3091_vm1, %v3090_v3  ;;  %2928 = vmatpush3.bf16.msra.mxu1 %v2927_v30  ;;  %v2278_v59 = vld [vmem:[%s3381_s4] sm:$0xff]  ;;  %v2603_v8 = vld [vmem:[#allocation9 + $0x120] ss:$0 sm:$0xff] }
 0xc6c   :  { %2929 = vmatprep.subr.bf16.mxu1 %v3092_v14  ;;  %2935 = vmatprep.subr.bf16.mxu0 %v3092_v14 }
 0xc6d   :  { %2872 = vmatprep.mubr.msk.f32.mxu0 %vm3091_vm1, %v3090_v3  ;;  %3002 = vset.pattern.permute.xlu0 %v3097_v60 }
 0xc6e   :  { %2842 = vmatmul.mubr.msk.f32.vlgmr.msra.gmra.mrb[2].mxu1 %vm295_vm4, %v3274_v26  ;;  %v2191_v26 = vld [vmem:[#allocation9 + $0xe8] sm:$0xff]  ;;  %2281 = vperm.xlu1 %3001, %v2278_v59  }
 0xc6f   :  { %2848 = vmatprep.mubr.msk.f32.mxu1 %vm3091_vm1, %v3090_v3  ;;  %2931 = vmatpush3.bf16.msra.mxu1 %v2930_v34  ;;  %v2936_v38 = vpack.c.bf16 %v2192_v21, %v2191_v26 }
 0xc70   :  { %2932 = vmatprep.subr.bf16.mxu1 %v3092_v14 }
 0xc71   :  { %2937 = vmatpush3.bf16.msra.mxu0 %v2936_v38 }
 0xc72   :  { %2938 = vmatprep.subr.bf16.mxu0 %v3092_v14  ;;  %2284 = vperm.xlu1 %3001, %v2279_v40  }
 0xc75   :  { %2940 = vmatpush3.bf16.msra.mxu0 %v2939_v43 }
 0xc76   :  { %2849 = vmatmul.mubr.msk.f32.vlgmr.msra.gmra.mrb[2].mxu1 %vm295_vm4, %v3305_v63  ;;  %2941 = vmatprep.subr.bf16.mxu0 %v3092_v14  ;;  %v2197_v14 = vld [vmem:[#allocation9 + $0x118] sm:$0xff] }
 0xc77   :  { %2934 = vmatpush3.bf16.msra.mxu1 %v2933_v37  ;;  %2855 = vmatprep.mubr.msk.f32.mxu1 %vm3091_vm1, %v3090_v3 }
 0xc79   :  { %2943 = vmatpush3.bf16.msra.mxu0 %v2942_v58 }
 0xc7a   :  { %2870 = vmatprep.subr.mxu0 %v3090_v3 }
 0xc7d   :  { %2871 = vmatpush3.msra.mxu0 %v2197_v14 }
 0xc7e   :  { %2880 = vmatprep.subr.mxu0 %v3090_v3 }
 0xced   :  { %v2282_v6 = vpop.permute.xlu1 %2281 }
 0xcee   :  { %vm2286_vm9 = vcmp.eq.s32.totalorder %v2282_v6, %v2277_v5 }
 0xcef   :  { %v2605_v7 = vsel %vm2286_vm9, 1.0, %v3090_v3 }
 0xcf1   :  { %v2285_v9 = vpop.permute.xlu1 %2284 }
 0xcf2   :  { %vm2287_vm10 = vcmp.eq.s32.totalorder %v2285_v9, %v2277_v5 }
 0xcf3   :  { %v2606_v42 = vsel %vm2287_vm10, 1.0, %v3090_v3 }
 0xd39   :  { %v1777_v11 = vpop.f32.mrb[0].mxu0 }
 0xd3a   :  { %v1778_v12 = vadd.f32 %v1777_v11, %v1710_v10  ;;  %v2824_v13 = vpop.f32.mrb[1].mxu0 }
 0xd3c   :  { %v1786_v15 = vrot.slane %v1778_v12, %v3226_v46  ;;  %v2374_v12 = vld [vmem:[#allocation9 + $0x128] sm:$0xff] }
 0xd3d   :  { %v1856_v16 = vpop.f32.mrb[0].mxu1  ;;  %v1954_v54 = vpop.f32.mrb[2].mxu0 }
 0xd3e   :  { %v1857_v17 = vadd.f32 %v1856_v16, %v1786_v15  ;;  %v2831_v18 = vpop.f32.mrb[1].mxu1  ;;  %v2836_v55 = vpop.f32.mrb[3].mxu0  ;;  %v1955_v62 = vadd.f32 %v1954_v54, %v1887_v61 }
 0xd3f   :  { %v2609_v18 = vld [vmem:[#allocation9 + $0x130] ss:$0 sm:$0xff] }
 0xd40   :  { %v1860_v19 = vmax.f32 %v1857_v17, 0.0  ;;  %v2036_v63 = vrot.slane %v1955_v62, %v3226_v46  ;;  %v2454_v17 = vld [vmem:[#allocation9 + $0x138] sm:$0xff] }
 0xd42   :  { %v1861_v20 = vsel %vm295_vm4, %v1860_v19, 0.0 }
 0xd43   :  { %1862 = vadd.xlane.f32.xlu0 %v1861_v20 }
 0xdd0   :  { %v1863_v22 = vpop.xlane.xlu0 %1862 }
 0xdd1   :  { %v1864_v23 = vmul.f32 0.0625, %v1863_v22 }
 0xdd3   :  { %v1865_v24 = vsub.f32 %v1860_v19, %v1864_v23 }
 0xdd5   :  { %v1866_v25 = vmul.f32 %v1865_v24, %v1865_v24 }
 0xdd7   :  { %v1867_v27 = vsel %vm295_vm4, %v1866_v25, 0.0 }
 0xdd8   :  { %1868 = vadd.xlane.f32.xlu0 %v1867_v27 }
 0xe65   :  { %v1869_v44 = vpop.xlane.xlu0 %1868 }
 0xe66   :  { %v1870_v45 = vmul.f32 0.0625, %v1869_v44 }
 0xe68   :  { %v1871_v47 = vadd.f32 1e-05, %v1870_v45 }
 0xe6a   :  { %3003 = vrsqrt.f32 %v1871_v47 }
 0xe74   :  { %v3004_v48 = vpop.eup %3003 }
 0xe75   :  { %v1873_v50 = vmul.f32 %v3004_v48, %v1865_v24  ;;  %v2611_v24 = vld [vmem:[#allocation9 + $0x140] ss:$0 sm:$0xff] }
 0xe77   :  { %v1879_v52 = vmul.f32 %v2597_v49, %v1873_v50 }
 0xe79   :  { %v1885_v53 = vadd.f32 %v2598_v51, %v1879_v52 }
 0xe7b   :  { %2856 = vmatmul.mubr.msk.f32.vlgmr.msra.gmra.mrb[2].mxu1 %vm295_vm4, %v1885_v53 }
 0xe7c   :  { %2877 = vmatprep.mubr.msk.f32.mxu1 %vm128_vm3, %v2605_v7 }
 0xf4e   :  { %v2185_v0 = vpop.f32.mrb[2].mxu1 }
 0xf4f   :  { %v2949_v1 = vadd.f32 %v2185_v0, %v2036_v63  ;;  %v2857_v2 = vpop.f32.mrb[3].mxu1 }
 0xf51   :  { %v2190_v4 = vmax.f32 %v2949_v1, 0.0 }
 0xf53   :  { %2873 = vmatmul.mubr.msk.f32.vlgmr.msra.gmra.mrb[4].mxu0 %vm1039_vm5, %v2190_v4 }
 0xf54   :  { %2882 = vmatprep.mubr.msk.f32.mxu0 %vm3091_vm1, %v3090_v3  ;;  %2881 = vmatpush3.msra.mxu0 %v2374_v12 }
0x1026   :  { %v2272_v46 = vpop.f32.mrb[4].mxu0 }
0x1027   :  { %v2273_v10 = vadd.f32 %v2603_v8, %v2272_v46  ;;  %v2874_v11 = vpop.f32.mrb[5].mxu0 }
0x1029   :  { %2875 = vmatprep.subr.mxu1 %v2273_v10 }
0x102a   :  { %2876 = vmatpush3.msra.mxu1 %v2273_v10 }
0x102b   :  { %2878 = vmatmul.mubr.msk.f32.vlgmr.msra.gmra.mrb[4].mxu1 %vm128_vm3, %v2606_v42  ;;  %2885 = vmatprep.subr.mxu1 %v3090_v3 }
0x102c   :  { %2887 = vmatprep.mubr.msk.f32.mxu1 %vm3091_vm1, %v3090_v3  ;;  %2886 = vmatpush3.msra.mxu1 %v2454_v17 }
0x10fe   :  { %v2879_v13 = vpop.f32.mrb[4].mxu1 }
0x10ff   :  { %v2364_v15 = vpop.f32.mrb[5].mxu1 }
0x1100   :  { %v2373_v16 = vmul.f32 %v2879_v13, %v2364_v15 }
0x1102   :  { %2883 = vmatmul.mubr.msk.f32.vlgmr.msra.gmra.mrb[6].mxu0 %vm128_vm3, %v2373_v16 }
0x11d5   :  { %v2449_v19 = vpop.f32.mrb[6].mxu0 }
0x11d6   :  { %v2450_v20 = vadd.f32 %v2609_v18, %v2449_v19  ;;  %v2884_v22 = vpop.f32.mrb[7].mxu0 }
0x11d8   :  { %v2453_v23 = vmax.f32 %v2450_v20, 0.0 }
0x11da   :  { %2888 = vmatmul.mubr.msk.f32.vlgmr.msra.gmra.mrb[6].mxu1 %vm128_vm3, %v2453_v23 }
0x12ad   :  { %v2529_v25 = vpop.f32.mrb[6].mxu1 }
0x12ae   :  { %v2530_v27 = vadd.f32 %v2611_v24, %v2529_v25  ;;  %v2889_v3 = vpop.f32.mrb[7].mxu1 }
0x12b0   :  { %2533 = vst [vmem:[%s3386_s9] sm:$0xff] %v2530_v27 }
0x12b1   :  { %2542 = vsyncpa [#allocation6], 1 }
0x12b2   :  { %2543 = vsyncpa [#allocation10], 1 }
0x12b3   :  { %2544 = vsyncpa [#allocation7], 1 }
0x12b4   :  { %2545 = vsyncmov [#allocation3] }
0x12b7   :  { %s2546_s16 = vpop.sfrf %2545 }
0x12b8   :  { %p2613_p8 = scmp.ne.s32.totalorder %s2546_s16, 0 }
0x12ba   :  { %2550 = shalt.err (%p2613_p8)  }

</bundles_post_ra>
